<compile_context>
chip_gen: v6e
topology: v6e:2x2x1
jax: 0.10.0
libtpu: 0.0.40
codegen_flags: <defaults>
</compile_context>

<pallas_src>
import functools

import jax
import jax.numpy as jnp
from jax.experimental import pallas as pl
from jax.experimental.pallas import tpu as pltpu


def _round_up(x, m):
    return ((x + m - 1) // m) * m


# ----------------------------------------------------------------------------
# Kernel 1: conv stem as matmul.
#   per grid step: o[cf, hw_tile] = SiLU( w[cf, ckk] @ p[ckk, hw_tile] + b[cf] )
#   Output layout (N, Cf, Ho*Wo) is already channel-major => no transpose later.
# ----------------------------------------------------------------------------
def _conv_stem_kernel(p_ref, w_ref, b_ref, o_ref):
    # p_ref: (CKKp, THW) bf16   w_ref: (Cf, CKKp) bf16
    # b_ref: (Cf, 1) f32        o_ref: (Cf, THW)  f32
    y = jnp.dot(w_ref[...], p_ref[...], preferred_element_type=jnp.float32)
    y = y + b_ref[...]
    o_ref[...] = y * jax.nn.sigmoid(y)  # SiLU, f32 math (v5e-friendly)


def _choose_tile_hw(hw, max_tile=4096):
    # Full spatial extent if small; otherwise the largest multiple-of-128
    # divisor of hw (keeps output blocks lane-aligned and exactly dividing).
    if hw <= max_tile:
        return hw
    best = 0
    t = 128
    while t <= max_tile:
        if hw % t == 0:
            best = t
        t += 128
    return best if best else hw


def conv_stem_pallas(patches, w_t, b, *, tile_hw):
    # patches: (N, CKKp, HW) bf16, w_t: (Cf, CKKp) bf16, b: (Cf, 1) f32
    N, CKKp, HW = patches.shape
    Cf = w_t.shape[0]
    assert HW % tile_hw == 0
    grid = (N, HW // tile_hw)
    return pl.pallas_call(
        _conv_stem_kernel,
        out_shape=jax.ShapeDtypeStruct((N, Cf, HW), jnp.float32),
        grid=grid,
        in_specs=[
            pl.BlockSpec((None, CKKp, tile_hw), lambda n, h: (n, 0, h)),
            pl.BlockSpec((Cf, CKKp), lambda n, h: (0, 0)),
            pl.BlockSpec((Cf, 1), lambda n, h: (0, 0)),
        ],
        out_specs=pl.BlockSpec((None, Cf, tile_hw), lambda n, h: (n, 0, h)),
        compiler_params=pltpu.CompilerParams(
            dimension_semantics=("parallel", "parallel"),
            vmem_limit_bytes=32 * 1024 * 1024,
        ),
    )(patches, w_t, b)


# ----------------------------------------------------------------------------
# Kernel 2: MVCNN head — max over views, then Linear, tiled over the feature
# (reduction) dimension.  Accumulates directly into the resident output block.
# ----------------------------------------------------------------------------
def _maxlin_kernel(f_ref, w_ref, b_ref, o_ref):
    # f_ref: (B, n_view, TF)  w_ref: (TF, D)  b_ref: (1, D)  o_ref: (B, D)
    @pl.when(pl.program_id(0) == 0)
    def _():
        o_ref[...] = jnp.broadcast_to(b_ref[...], o_ref.shape)

    g = jnp.max(f_ref[...], axis=1)  # (B, TF): max over views
    o_ref[...] += jnp.dot(g, w_ref[...], preferred_element_type=jnp.float32)


def _choose_tile_f(F, max_tile=8192):
    # Whole F in one step when it fits comfortably; else the largest
    # multiple-of-128 divisor of F (e.g. 6272 for F = 1280*7*7 = 62720).
    if F <= max_tile:
        return F
    best = 0
    t = 128
    while t <= max_tile:
        if F % t == 0:
            best = t
        t += 128
    return best if best else F


def mvcnn_head_pallas(view_fts, w, b, *, tile_f=None):
    # view_fts: (B, n_view, F) f32, w: (F, D) f32, b: (1, D) f32
    B, n_view, F = view_fts.shape
    D = w.shape[1]
    if tile_f is None:
        tile_f = _choose_tile_f(F)
    assert F % tile_f == 0
    grid = (F // tile_f,)
    return pl.pallas_call(
        _maxlin_kernel,
        out_shape=jax.ShapeDtypeStruct((B, D), jnp.float32),
        grid=grid,
        in_specs=[
            pl.BlockSpec((B, n_view, tile_f), lambda k: (0, 0, k)),
            pl.BlockSpec((tile_f, D), lambda k: (k, 0)),
            pl.BlockSpec((1, D), lambda k: (0, 0)),
        ],
        out_specs=pl.BlockSpec((B, D), lambda k: (0, 0)),
        compiler_params=pltpu.CompilerParams(
            dimension_semantics=("arbitrary",),
            vmem_limit_bytes=32 * 1024 * 1024,
        ),
    )(view_fts, w, b)


# ----------------------------------------------------------------------------
# Glue: channel-major im2col + full forward pass
# ----------------------------------------------------------------------------
def _im2col_cm(x, k=3, stride=2, pad=1):
    # x: (N, C, H, W) -> patches (N, C*k*k, Ho*Wo); contraction index ordered
    # (C, kh, kw) to match PyTorch's conv weight flattening (OIHW -> O, I*kH*kW).
    N, C, H, W = x.shape
    xp = jnp.pad(x, ((0, 0), (0, 0), (pad, pad), (pad, pad)))
    Ho = (H + 2 * pad - k) // stride + 1
    Wo = (W + 2 * pad - k) // stride + 1
    cols = []
    for i in range(k):
        for j in range(k):
            cols.append(xp[:, :, i:i + stride * Ho:stride, j:j + stride * Wo:stride])
    p = jnp.stack(cols, axis=2)                   # (N, C, k*k, Ho, Wo)
    p = p.reshape(N, C * k * k, Ho * Wo)          # (N, CKK, HW)
    return p, Ho, Wo


def mvcnn_feat_forward(params, view_batch, n_view):
    # view_batch: (B, n_view, C, H, W) float32
    assert view_batch.shape[1] == n_view
    B, _, C, H, W = view_batch.shape
    x = view_batch.reshape(-1, C, H, W)           # (B*n_view, C, H, W)
    N = x.shape[0]

    # --- FeatureNet (stand-in stem) ---
    # TODO(synk): in-kernel patch construction (no im2col HBM round-trip) is
    #   the next step; bf16 operands already halve the patch-stream DMA bytes.
    patches, Ho, Wo = _im2col_cm(x)               # (N, CKK, HW) f32
    CKK = patches.shape[1]
    CKKp = _round_up(CKK, 16)                     # bf16 sublane-align contraction dim
    patches = jnp.pad(patches, ((0, 0), (0, CKKp - CKK), (0, 0)))
    patches = patches.astype(jnp.bfloat16)

    Cf = params["conv_w"].shape[0]
    w_t = params["conv_w"].reshape(Cf, -1)        # (Cf, CKK), PyTorch flatten order
    w_t = jnp.pad(w_t, ((0, 0), (0, CKKp - CKK))).astype(jnp.bfloat16)
    b = params["conv_b"].reshape(Cf, 1).astype(jnp.float32)

    HW = Ho * Wo
    y = conv_stem_pallas(patches, w_t, b, tile_hw=_choose_tile_hw(HW))  # (N, Cf, HW)

    # (Cf, Ho*Wo) per image is already the NCHW flatten order of torch .view(N, -1)
    feat = y.reshape(N, Cf * HW)                  # (N, F)

    # --- MVCNN head: max over views + Linear ---
    local_view_fts = feat.reshape(B, n_view, -1)
    return mvcnn_head_pallas(local_view_fts, params["fc_w"], params["fc_b"])


# ----------------------------------------------------------------------------
# Pure-JAX reference (independent path: lax.conv) for correctness checking
# ----------------------------------------------------------------------------
def mvcnn_feat_reference(params, view_batch, n_view):
    B, _, C, H, W = view_batch.shape
    x = view_batch.reshape(-1, C, H, W)
    y = jax.lax.conv_general_dilated(
        x, params["conv_w"], window_strides=(2, 2), padding=((1, 1), (1, 1)),
        dimension_numbers=("NCHW", "OIHW", "NCHW"))
    y = y + params["conv_b"].reshape(1, -1, 1, 1)
    y = y * jax.nn.sigmoid(y)                     # SiLU
    feat = y.reshape(y.shape[0], -1)              # NCHW flatten
    local = feat.reshape(B, n_view, -1)
    g = jnp.max(local, axis=1)
    return g @ params["fc_w"] + params["fc_b"]


# ----------------------------------------------------------------------------
if __name__ == "__main__":
    # Small shapes consistent with the module's forward:
    B, n_view, C, H, W = 2, 3, 4, 16, 16
    Cf = 32                      # stem output channels (stand-in for 1280)
    Ho = Wo = H // 2             # conv 3x3 stride 2 pad 1
    feature_len = Cf * Ho * Wo   # 32 * 8 * 8 = 2048
    feature_dim = 32

    key = jax.random.PRNGKey(0)
    k1, k2, k3, k4, k5 = jax.random.split(key, 5)

    params = {
        # conv stem weights, PyTorch layout (Cf, C, kH, kW)
        "conv_w": jax.random.normal(k1, (Cf, C, 3, 3), jnp.float32) * 0.1,
        "conv_b": jax.random.normal(k2, (Cf,), jnp.float32) * 0.1,
        # cls_net: nn.Linear(feature_len, feature_dim) -> stored as (F, D)
        "fc_w": jax.random.normal(k3, (feature_len, feature_dim), jnp.float32) * 0.02,
        "fc_b": (jax.random.normal(k4, (feature_dim,), jnp.float32) * 0.02).reshape(1, -1),
    }

    view_batch = jax.random.normal(k5, (B, n_view, C, H, W), jnp.float32)

    fwd = jax.jit(functools.partial(mvcnn_feat_forward, n_view=n_view))
    out = fwd(params, view_batch)
    out = jax.block_until_ready(out)

    ref = mvcnn_feat_reference(params, view_batch, n_view)
    assert out.shape == (B, feature_dim), out.shape
    # bf16 matmul operands in the stem => slightly looser tolerance than pure f32
    assert jnp.allclose(out, ref, atol=3e-2, rtol=3e-2), "mismatch vs reference"

    print("KERNEL_OK")
</pallas_src>

<mosaic_0001>
module attributes {stable_mosaic.version = 11 : i64} {
  func.func @_conv_stem_kernel(%arg0: i32, %arg1: i32, %arg2: memref<1x48x64xbf16, #tpu.memory_space<vmem>>, %arg3: memref<32x48xbf16, #tpu.memory_space<vmem>>, %arg4: memref<32x1xf32, #tpu.memory_space<vmem>>, %arg5: memref<1x32x64xf32, #tpu.memory_space<vmem>>) attributes {dimension_semantics = [#tpu.dimension_semantics<parallel>, #tpu.dimension_semantics<parallel>], iteration_bounds = array<i64: 6, 1>, scalar_prefetch = 0 : i64, scratch_operands = 0 : i64, tpu.core_type = #tpu.core_type<tc>, window_params = [{transform_indices = @transform_0, window_bounds = array<i64: 1, 48, 64>}, {pipeline_mode = #tpu.pipeline_mode<synchronous>, transform_indices = @transform_1, window_bounds = array<i64: 32, 48>}, {pipeline_mode = #tpu.pipeline_mode<synchronous>, transform_indices = @transform_2, window_bounds = array<i64: 32, 1>}, {transform_indices = @transform_3, window_bounds = array<i64: 1, 32, 64>}]} {
    %c0 = arith.constant 0 : index
    %c0_0 = arith.constant 0 : index
    %0 = vector.load %arg3[%c0, %c0_0] : memref<32x48xbf16, #tpu.memory_space<vmem>>, vector<32x48xbf16>
    %c0_1 = arith.constant 0 : index
    %c0_2 = arith.constant 0 : index
    %c0_3 = arith.constant 0 : index
    %1 = vector.load %arg2[%c0_1, %c0_2, %c0_3] : memref<1x48x64xbf16, #tpu.memory_space<vmem>>, vector<1x48x64xbf16>
    %2 = vector.shape_cast %1 : vector<1x48x64xbf16> to vector<48x64xbf16>
    %cst = arith.constant dense<0.000000e+00> : vector<32x64xf32>
    %3 = tpu.matmul %0, %2, %cst {dimension_numbers = #tpu.dot_dimension_numbers<[1], [0], [0], [1], [0, 0, 1, 1], [], []>} : vector<32x48xbf16>, vector<48x64xbf16>, vector<32x64xf32> -> vector<32x64xf32>
    %c0_4 = arith.constant 0 : index
    %c0_5 = arith.constant 0 : index
    %4 = vector.load %arg4[%c0_4, %c0_5] : memref<32x1xf32, #tpu.memory_space<vmem>>, vector<32x1xf32>
    %5 = vector.broadcast %4 : vector<32x1xf32> to vector<32x64xf32>
    %6 = arith.addf %3, %5 : vector<32x64xf32>
    %7 = arith.negf %6 : vector<32x64xf32>
    %8 = math.exp %7 : vector<32x64xf32>
    %cst_6 = arith.constant 1.000000e+00 : f32
    %9 = vector.broadcast %cst_6 : f32 to vector<32x64xf32>
    %10 = arith.addf %9, %8 : vector<32x64xf32>
    %11 = arith.divf %9, %10 : vector<32x64xf32>
    %12 = arith.mulf %6, %11 : vector<32x64xf32>
    %c0_7 = arith.constant 0 : index
    %c0_8 = arith.constant 0 : index
    %c0_9 = arith.constant 0 : index
    %13 = vector.load %arg5[%c0_7, %c0_8, %c0_9] : memref<1x32x64xf32, #tpu.memory_space<vmem>>, vector<1x32x64xf32>
    %14 = vector.shape_cast %13 : vector<1x32x64xf32> to vector<32x64xf32>
    %15 = vector.shape_cast %12 : vector<32x64xf32> to vector<1x32x64xf32>
    tpu.vector_store %arg5[%c0_7, %c0_8, %c0_9], %15 {strides = array<i32>} : memref<1x32x64xf32, #tpu.memory_space<vmem>>, vector<1x32x64xf32>,
    return
  }
  func.func @transform_0(%arg0: i32, %arg1: i32) -> (i32, i32, i32) {
    %c0_i32 = arith.constant 0 : i32
    %c0_i32_0 = arith.constant 0 : i32
    return %arg0, %c0_i32, %arg1 : i32, i32, i32
  }
  func.func @transform_1(%arg0: i32, %arg1: i32) -> (i32, i32) {
    %c0_i32 = arith.constant 0 : i32
    %c0_i32_0 = arith.constant 0 : i32
    %c0_i32_1 = arith.constant 0 : i32
    return %c0_i32, %c0_i32_0 : i32, i32
  }
  func.func @transform_2(%arg0: i32, %arg1: i32) -> (i32, i32) {
    %c0_i32 = arith.constant 0 : i32
    %c0_i32_0 = arith.constant 0 : i32
    %c0_i32_1 = arith.constant 0 : i32
    return %c0_i32, %c0_i32_0 : i32, i32
  }
  func.func @transform_3(%arg0: i32, %arg1: i32) -> (i32, i32, i32) {
    %c0_i32 = arith.constant 0 : i32
    %c0_i32_0 = arith.constant 0 : i32
    return %arg0, %c0_i32, %arg1 : i32, i32, i32
  }
}

module attributes {stable_mosaic.version = 11 : i64} {
  func.func @_maxlin_kernel(%arg0: i32, %arg1: memref<2x3x2048xf32, #tpu.memory_space<vmem>>, %arg2: memref<2048x32xf32, #tpu.memory_space<vmem>>, %arg3: memref<1x32xf32, #tpu.memory_space<vmem>>, %arg4: memref<2x32xf32, #tpu.memory_space<vmem>>) attributes {dimension_semantics = [#tpu.dimension_semantics<arbitrary>], iteration_bounds = array<i64: 1>, scalar_prefetch = 0 : i64, scratch_operands = 0 : i64, tpu.core_type = #tpu.core_type<tc>, window_params = [{transform_indices = @transform_0, window_bounds = array<i64: 2, 3, 2048>}, {transform_indices = @transform_1, window_bounds = array<i64: 2048, 32>}, {pipeline_mode = #tpu.pipeline_mode<synchronous>, transform_indices = @transform_2, window_bounds = array<i64: 1, 32>}, {pipeline_mode = #tpu.pipeline_mode<synchronous>, transform_indices = @transform_3, window_bounds = array<i64: 2, 32>}]} {
    %c0_i32 = arith.constant 0 : i32
    %0 = arith.cmpi eq, %arg0, %c0_i32 : i32
    %1 = arith.extui %0 : i1 to i32
    %c0_i32_0 = arith.constant 0 : i32
    %2 = arith.cmpi ne, %1, %c0_i32_0 : i32
    scf.if %2 {
      %c0_10 = arith.constant 0 : index
      %c0_11 = arith.constant 0 : index
      %10 = vector.load %arg3[%c0_10, %c0_11] : memref<1x32xf32, #tpu.memory_space<vmem>>, vector<1x32xf32>
      %11 = vector.shape_cast %10 : vector<1x32xf32> to vector<1x32xf32>
      %12 = vector.broadcast %11 : vector<1x32xf32> to vector<2x32xf32>
      %c0_12 = arith.constant 0 : index
      %c0_13 = arith.constant 0 : index
      %13 = vector.load %arg4[%c0_12, %c0_13] : memref<2x32xf32, #tpu.memory_space<vmem>>, vector<2x32xf32>
      tpu.vector_store %arg4[%c0_12, %c0_13], %12 {strides = array<i32>} : memref<2x32xf32, #tpu.memory_space<vmem>>, vector<2x32xf32>,
    } else {
    }
    %c0 = arith.constant 0 : index
    %c0_1 = arith.constant 0 : index
    %c0_2 = arith.constant 0 : index
    %3 = vector.load %arg1[%c0, %c0_1, %c0_2] : memref<2x3x2048xf32, #tpu.memory_space<vmem>>, vector<2x3x2048xf32>
    %cst = arith.constant dense<0xFF800000> : vector<2x2048xf32>
    %4 = vector.multi_reduction <maximumf>, %3, %cst [1] : vector<2x3x2048xf32> to vector<2x2048xf32>
    %c0_3 = arith.constant 0 : index
    %c0_4 = arith.constant 0 : index
    %5 = vector.load %arg4[%c0_3, %c0_4] : memref<2x32xf32, #tpu.memory_space<vmem>>, vector<2x32xf32>
    %c0_5 = arith.constant 0 : index
    %c0_6 = arith.constant 0 : index
    %6 = vector.load %arg2[%c0_5, %c0_6] : memref<2048x32xf32, #tpu.memory_space<vmem>>, vector<2048x32xf32>
    %cst_7 = arith.constant dense<0.000000e+00> : vector<2x32xf32>
    %7 = tpu.matmul %4, %6, %cst_7 {dimension_numbers = #tpu.dot_dimension_numbers<[1], [0], [0], [1], [0, 0, 1, 1], [], []>} : vector<2x2048xf32>, vector<2048x32xf32>, vector<2x32xf32> -> vector<2x32xf32>
    %8 = arith.addf %5, %7 : vector<2x32xf32>
    %c0_8 = arith.constant 0 : index
    %c0_9 = arith.constant 0 : index
    %9 = vector.load %arg4[%c0_8, %c0_9] : memref<2x32xf32, #tpu.memory_space<vmem>>, vector<2x32xf32>
    tpu.vector_store %arg4[%c0_8, %c0_9], %8 {strides = array<i32>} : memref<2x32xf32, #tpu.memory_space<vmem>>, vector<2x32xf32>,
    return
  }
  func.func @transform_0(%arg0: i32) -> (i32, i32, i32) {
    %c0_i32 = arith.constant 0 : i32
    %c0_i32_0 = arith.constant 0 : i32
    %c0_i32_1 = arith.constant 0 : i32
    return %c0_i32, %c0_i32_0, %arg0 : i32, i32, i32
  }
  func.func @transform_1(%arg0: i32) -> (i32, i32) {
    %c0_i32 = arith.constant 0 : i32
    %c0_i32_0 = arith.constant 0 : i32
    return %arg0, %c0_i32 : i32, i32
  }
  func.func @transform_2(%arg0: i32) -> (i32, i32) {
    %c0_i32 = arith.constant 0 : i32
    %c0_i32_0 = arith.constant 0 : i32
    %c0_i32_1 = arith.constant 0 : i32
    return %c0_i32, %c0_i32_0 : i32, i32
  }
  func.func @transform_3(%arg0: i32) -> (i32, i32) {
    %c0_i32 = arith.constant 0 : i32
    %c0_i32_0 = arith.constant 0 : i32
    %c0_i32_1 = arith.constant 0 : i32
    return %c0_i32, %c0_i32_0 : i32, i32
  }
}

</mosaic_0001>

<bundles_post_ra>
// kernel: mvcnn_feat_forward.2
= control target key start
LH: loop header
LB: loop body
LE: loop exit
PB: predicated region body
PF: predicated region fallthrough
CT: control target
= control target key end

     0   :  { %s568_s12 = smov 0   ;;  %s570_s13 = smov 0   ;;  %s625_s0 = inlined_call_operand.vmem [shape: bf16[6,48,64], index: 0, kind: input, shape index: {}]   ;;  %s626_s1 = inlined_call_operand.vmem [shape: bf16[32,48], index: 1, kind: input, shape index: {}]   ;;  %s627_s2 = inlined_call_operand.vmem [shape: f32[32,1], index: 2, kind: input, shape index: {}]   ;;  %s628_s3 = inlined_call_operand.vmem [shape: f32[6,32,64], index: 3, kind: output, shape index: {}]  }
   0x1   :  { %s572_s14 = smov 0  }
   0x2 LB: > { %s25_s15 = sadd.s32 1, %s541_s13  ;;  %p441_p0 = scmp.ge.s32.totalorder %s545_s14, 1  ;;  %s545_s14 = sphi %s572_s14, %s13_s14   ;;  %s541_s13 = sphi %s570_s13, %s630_s13   ;;  %s537_s12 = sphi %s568_s12, %s629_s12  }
   0x3   : > { %p27_p1 = scmp.ge.s32.totalorder %s25_s15, 6  ;;  %p156_p2 = scmp.lt.s32.totalorder %s545_s14, 7 }
   0x5   : > { %s632_s15 = smov (%p27_p1, %s25_s15), 0  ;;  %p157_p3 = pnand %p441_p0, %p156_p2 }
   0x6   : > { %p186_p4 = scmp.lt.s32.totalorder (!%p157_p3), %s537_s12, 5 }
   0x7   : > { %160 = sbr.rel (%p157_p3) target bundleno = 265 (0x109), region = 32 }
   0xc   : > { %v505_v0 = vld [vmem:[%s626_s1] sm:$0xff]   ;;  %vm265_vm0 = vcmask 392192   ;;  %s634_s12 = smov (!%p186_p4, %s537_s12), 5  ;;  %v215_v1 = vld [vmem:[%s627_s2 + $0x10] sm:$0xff]  ;;  %v547_v3 = vmov 0   ;;  %v216_v4 = vld [vmem:[%s627_s2 + $0x18] sm:$0xff] }
   0xd   : > { %470 = vmatprep.mubr.msk.bf16.mxu0 %vm265_vm0, %v505_v0  ;;  %v213_v2 = vld [vmem:[%s627_s2] sm:$0xff]  ;;  %501 = vset.pattern.permute.xlu1 %v547_v3  ;;  %s474_s22 = smul.u32 24, %s634_s12  ;;  %v214_v5 = vld [vmem:[%s627_s2 + $0x8] sm:$0xff]  ;;  %s458_s5 = sshll.u32 %s634_s12, 5  ;;  %vm349_vm1 = vcmask 523264  }
   0xe   : > { %500 = vset.pattern.permute.xlu0 %v547_v3  ;;  %229 = vperm.xlu1 %501, %v215_v1   ;;  %v506_v9 = vld [vmem:[%s626_s1 + $0x8] sm:$0xff]   ;;  %s201_s8 = scalar_lea.vmem %s628_s3, %s458_s5 }
   0xf   : > { %219 = vperm.xlu0 %500, %v213_v2   ;;  %s193_s29 = scalar_lea.vmem %s625_s0, %s474_s22 }
  0x10   : > { %v502_v6 = vld [vmem:[%s193_s29 + $0x10] sm:$0xff]   ;;  %v503_v7 = vld [vmem:[%s193_s29 + $0x8] sm:$0xff]   ;;  %v504_v8 = vld [vmem:[%s193_s29] sm:$0xff]  }
  0x11   : > { %464 = vmatprep.subr.bf16.mxu0 %v502_v6 }
  0x12   : > { %234 = vperm.xlu1 %501, %v216_v4   ;;  %465 = vmatpush3.bf16.msra.mxu0 %v502_v6 }
  0x13   : > { %224 = vperm.xlu0 %500, %v214_v5   ;;  %466 = vmatprep.subr.bf16.mxu0 %v503_v7 }
  0x16   : > { %467 = vmatpush3.bf16.msra.mxu0 %v503_v7 }
  0x17   : > { %468 = vmatprep.subr.bf16.mxu0 %v504_v8 }
  0x1a   : > { %469 = vmatpush3.bf16.msra.mxu0 %v504_v8 }
  0x1d   : > { %471 = vmatmul.mubr.msk.bf16.vlgmr.msra.gmra.mxu0 %vm265_vm0, %v506_v9 }
  0x89   : > { %v230_v10 = vpop.permute.xlu1 %229 }
  0x8a   : > { %v220_v11 = vpop.permute.xlu0 %219 }
  0x8d   : > { %v235_v17 = vpop.permute.xlu1 %234 }
  0x8e   : > { %v225_v21 = vpop.permute.xlu0 %224 }
  0xdd   : > { %v472_v12 = vpop.f32.mrf.mxu0 }
  0xde   : > { %v315_v13 = vadd.f32 %v472_v12, %v230_v10 }
  0xdf   : > { %v306_v14 = vpop.f32.mrf.mxu0 }
  0xe0   : > { %v454_v15 = vmul.f32 -1.442695, %v315_v13  ;;  %v307_v16 = vadd.f32 %v306_v14, %v220_v11 }
  0xe1   : > { %v473_v18 = vpop.f32.mrf.mxu0 }
  0xe2   : > { %507 = vpow2.f32 %v454_v15  ;;  %v452_v19 = vmul.f32 -1.442695, %v307_v16  ;;  %v318_v20 = vadd.f32 %v473_v18, %v235_v17 }
  0xe3   : > { %v309_v22 = vpop.f32.mrf.mxu0 }
  0xe4   : > { %509 = vpow2.f32 %v452_v19  ;;  %v455_v23 = vmul.f32 -1.442695, %v318_v20  ;;  %v310_v24 = vadd.f32 %v309_v22, %v225_v21 }
  0xe6   : > { %511 = vpow2.f32 %v455_v23  ;;  %v453_v25 = vmul.f32 -1.442695, %v310_v24 }
  0xe8   : > { %513 = vpow2.f32 %v453_v25 }
  0xef   : > { %v508_v26 = vpop.eup %507 }
  0xf0   : > { %v335_v27 = vadd.f32 1.0, %v508_v26 }
  0xf1   : > { %v510_v28 = vpop.eup %509 }
  0xf2   : > { %515 = vrcp.f32 %v335_v27  ;;  %v333_v29 = vadd.f32 1.0, %v510_v28 }
  0xf3   : > { %v512_v30 = vpop.eup %511 }
  0xf4   : > { %517 = vrcp.f32 %v333_v29  ;;  %v336_v31 = vadd.f32 1.0, %v512_v30 }
  0xf5   : > { %v514_v32 = vpop.eup %513 }
  0xf6   : > { %519 = vrcp.f32 %v336_v31  ;;  %v334_v33 = vadd.f32 1.0, %v514_v32 }
  0xf8   : > { %521 = vrcp.f32 %v334_v33 }
  0xff   : > { %v516_v34 = vpop.eup %515 }
 0x100   : > { %v347_v35 = vmul.f32 %v516_v34, %v315_v13 }
 0x101   : > { %v518_v36 = vpop.eup %517 }
 0x102   : > { %352 = vst.msk [vmem:[%s201_s8 + $0x10] sm:$0xff] %vm349_vm1, %v347_v35  ;;  %v345_v37 = vmul.f32 %v518_v36, %v307_v16 }
 0x103   : > { %v520_v38 = vpop.eup %519 }
 0x104   : > { %350 = vst.msk [vmem:[%s201_s8] sm:$0xff] %vm349_vm1, %v345_v37  ;;  %v348_v39 = vmul.f32 %v520_v38, %v318_v20 }
 0x105   : > { %v522_v40 = vpop.eup %521 }
 0x106   : > { %353 = vst.msk [vmem:[%s201_s8 + $0x18] sm:$0xff] %vm349_vm1, %v348_v39  ;;  %v346_v41 = vmul.f32 %v522_v40, %v310_v24 }
 0x108   : > { %351 = vst.msk [vmem:[%s201_s8 + $0x8] sm:$0xff] %vm349_vm1, %v346_v41 }
 0x109 PF: > { %s13_s14 = sadd.s32 1, %s545_s14   ;;  %s629_s12 = smov %s541_s13 }
 0x10a   : > { %p10_p5 = scmp.ge.s32.totalorder %s13_s14, 8   ;;  %s630_s13 = smov %s632_s15 }
 0x10c   :  { %12 = sbr.rel (!%p10_p5) target bundleno = 2 (0x2), region = 62 }

// kernel: mvcnn_feat_forward.3
= control target key start
LH: loop header
LB: loop body
LE: loop exit
PB: predicated region body
PF: predicated region fallthrough
CT: control target
= control target key end

     0   :  { %vm92_vm0 = vcmask 1042432   ;;  %vm606_vm1 = vcmask 1041409   ;;  %s2429_s0 = inlined_call_operand.vmem [shape: f32[2,3,2048], index: 0, kind: input, shape index: {}]   ;;  %s2430_s1 = inlined_call_operand.vmem [shape: f32[2048,32], index: 1, kind: input, shape index: {}]   ;;  %s2431_s2 = inlined_call_operand.vmem [shape: f32[1,32], index: 2, kind: input, shape index: {}]   ;;  %s2432_s3 = inlined_call_operand.hbm [shape: f32[2,32], index: 3, kind: output, shape index: {}]  }
   0x1   :  { %v349_v0 = vld [vmem:[%s2430_s1 + $0xf8] sm:$0xff]  ;;  %v348_v4 = vld [vmem:[%s2430_s1 + $0xf0] sm:$0xff]  ;;  %v347_v8 = vld [vmem:[%s2430_s1 + $0xe8] sm:$0xff] }
   0x2   :  { %v381_v1 = vld [vmem:[%s2430_s1 + $0x1f8] sm:$0xff]  ;;  %1217 = vmatprep.subr.mxu0 %v349_v0  ;;  %v380_v5 = vld [vmem:[%s2430_s1 + $0x1f0] sm:$0xff]  ;;  %v379_v9 = vld [vmem:[%s2430_s1 + $0x1e8] sm:$0xff] }
   0x3   :  { %v333_v2 = vld [vmem:[%s2430_s1 + $0x78] sm:$0xff]  ;;  %1252 = vmatprep.subr.mxu1 %v381_v1  ;;  %v332_v6 = vld [vmem:[%s2430_s1 + $0x70] sm:$0xff]  ;;  %v331_v10 = vld [vmem:[%s2430_s1 + $0x68] sm:$0xff] }
   0x4   :  { %v365_v3 = vld [vmem:[%s2430_s1 + $0x178] sm:$0xff]  ;;  %1218 = vmatpush3.msra.mxu0 %v333_v2  ;;  %v364_v7 = vld [vmem:[%s2430_s1 + $0x170] sm:$0xff]  ;;  %v363_v11 = vld [vmem:[%s2430_s1 + $0x168] sm:$0xff] }
   0x5   :  { %1253 = vmatpush3.msra.mxu1 %v365_v3  ;;  %1219 = vmatprep.subr.mxu0 %v348_v4  ;;  %v346_v12 = vld [vmem:[%s2430_s1 + $0xe0] sm:$0xff]  ;;  %v345_v16 = vld [vmem:[%s2430_s1 + $0xd8] sm:$0xff]  ;;  %v344_v20 = vld [vmem:[%s2430_s1 + $0xd0] sm:$0xff] }
   0x6   :  { %1254 = vmatprep.subr.mxu1 %v380_v5  ;;  %1220 = vmatpush3.msra.mxu0 %v332_v6  ;;  %v378_v13 = vld [vmem:[%s2430_s1 + $0x1e0] sm:$0xff]  ;;  %v377_v17 = vld [vmem:[%s2430_s1 + $0x1d8] sm:$0xff]  ;;  %v376_v21 = vld [vmem:[%s2430_s1 + $0x1d0] sm:$0xff] }
   0x7   :  { %1255 = vmatpush3.msra.mxu1 %v364_v7  ;;  %1221 = vmatprep.subr.mxu0 %v347_v8  ;;  %v330_v14 = vld [vmem:[%s2430_s1 + $0x60] sm:$0xff]  ;;  %v329_v18 = vld [vmem:[%s2430_s1 + $0x58] sm:$0xff]  ;;  %v328_v22 = vld [vmem:[%s2430_s1 + $0x50] sm:$0xff] }
   0x8   :  { %1256 = vmatprep.subr.mxu1 %v379_v9  ;;  %v362_v15 = vld [vmem:[%s2430_s1 + $0x160] sm:$0xff]  ;;  %1222 = vmatpush3.msra.mxu0 %v331_v10  ;;  %v361_v19 = vld [vmem:[%s2430_s1 + $0x158] sm:$0xff]  ;;  %v360_v23 = vld [vmem:[%s2430_s1 + $0x150] sm:$0xff] }
   0x9   :  { %1257 = vmatpush3.msra.mxu1 %v363_v11  ;;  %1223 = vmatprep.subr.mxu0 %v346_v12  ;;  %v343_v24 = vld [vmem:[%s2430_s1 + $0xc8] sm:$0xff]  ;;  %v342_v28 = vld [vmem:[%s2430_s1 + $0xc0] sm:$0xff]  ;;  %v341_v32 = vld [vmem:[%s2430_s1 + $0xb8] sm:$0xff] }
   0xa   :  { %1258 = vmatprep.subr.mxu1 %v378_v13  ;;  %1224 = vmatpush3.msra.mxu0 %v330_v14  ;;  %v375_v25 = vld [vmem:[%s2430_s1 + $0x1c8] sm:$0xff]  ;;  %v374_v29 = vld [vmem:[%s2430_s1 + $0x1c0] sm:$0xff]  ;;  %v373_v33 = vld [vmem:[%s2430_s1 + $0x1b8] sm:$0xff] }
   0xb   :  { %1259 = vmatpush3.msra.mxu1 %v362_v15  ;;  %1225 = vmatprep.subr.mxu0 %v345_v16  ;;  %v327_v26 = vld [vmem:[%s2430_s1 + $0x48] sm:$0xff]  ;;  %v326_v30 = vld [vmem:[%s2430_s1 + $0x40] sm:$0xff]  ;;  %v325_v34 = vld [vmem:[%s2430_s1 + $0x38] sm:$0xff] }
   0xc   :  { %1260 = vmatprep.subr.mxu1 %v377_v17  ;;  %1226 = vmatpush3.msra.mxu0 %v329_v18  ;;  %v359_v27 = vld [vmem:[%s2430_s1 + $0x148] sm:$0xff]  ;;  %v358_v31 = vld [vmem:[%s2430_s1 + $0x140] sm:$0xff]  ;;  %v357_v35 = vld [vmem:[%s2430_s1 + $0x138] sm:$0xff] }
   0xd   :  { %1261 = vmatpush3.msra.mxu1 %v361_v19  ;;  %1227 = vmatprep.subr.mxu0 %v344_v20  ;;  %v340_v36 = vld [vmem:[%s2430_s1 + $0xb0] sm:$0xff]  ;;  %v339_v40 = vld [vmem:[%s2430_s1 + $0xa8] sm:$0xff]  ;;  %v338_v44 = vld [vmem:[%s2430_s1 + $0xa0] sm:$0xff] }
   0xe   :  { %1262 = vmatprep.subr.mxu1 %v376_v21  ;;  %1228 = vmatpush3.msra.mxu0 %v328_v22  ;;  %v372_v37 = vld [vmem:[%s2430_s1 + $0x1b0] sm:$0xff]  ;;  %v371_v41 = vld [vmem:[%s2430_s1 + $0x1a8] sm:$0xff]  ;;  %v370_v45 = vld [vmem:[%s2430_s1 + $0x1a0] sm:$0xff] }
   0xf   :  { %1263 = vmatpush3.msra.mxu1 %v360_v23  ;;  %1229 = vmatprep.subr.mxu0 %v343_v24  ;;  %v324_v38 = vld [vmem:[%s2430_s1 + $0x30] sm:$0xff]  ;;  %v323_v42 = vld [vmem:[%s2430_s1 + $0x28] sm:$0xff]  ;;  %v322_v46 = vld [vmem:[%s2430_s1 + $0x20] sm:$0xff] }
  0x10   :  { %1264 = vmatprep.subr.mxu1 %v375_v25  ;;  %1230 = vmatpush3.msra.mxu0 %v327_v26  ;;  %v356_v39 = vld [vmem:[%s2430_s1 + $0x130] sm:$0xff]  ;;  %v355_v43 = vld [vmem:[%s2430_s1 + $0x128] sm:$0xff]  ;;  %v354_v47 = vld [vmem:[%s2430_s1 + $0x120] sm:$0xff] }
  0x11   :  { %1265 = vmatpush3.msra.mxu1 %v359_v27  ;;  %1231 = vmatprep.subr.mxu0 %v342_v28  ;;  %v337_v48 = vld [vmem:[%s2430_s1 + $0x98] sm:$0xff]  ;;  %v28_v50 = vld [vmem:[%s2429_s0] sm:$0x77]  ;;  %v29_v54 = vld [vmem:[%s2429_s0 + $0x8] sm:$0x77] }
  0x12   :  { %1266 = vmatprep.subr.mxu1 %v374_v29  ;;  %1232 = vmatpush3.msra.mxu0 %v326_v30  ;;  %v369_v49 = vld [vmem:[%s2430_s1 + $0x198] sm:$0xff]  ;;  %v36_v51 = vld [vmem:[%s2429_s0 + $0x40] sm:$0x77]  ;;  %v60_v52 = vcombine.high %v28_v50, %v28_v50  ;;  %v37_v55 = vld [vmem:[%s2429_s0 + $0x48] sm:$0x77]  ;;  %v93_v56 = vsel %vm92_vm0, %v28_v50, -inf  ;;  %v61_v60 = vcombine.high %v29_v54, %v29_v54 }
  0x13   :  { %1267 = vmatpush3.msra.mxu1 %v358_v31  ;;  %1233 = vmatprep.subr.mxu0 %v341_v32  ;;  %v68_v53 = vcombine.high %v36_v51, %v36_v51  ;;  %v205_v57 = vsel %vm92_vm0, %v36_v51, -inf  ;;  %v321_v58 = vld [vmem:[%s2430_s1 + $0x18] sm:$0xff]  ;;  %v69_v61 = vcombine.high %v37_v55, %v37_v55  ;;  %v94_v62 = vrot.slane %v93_v56, 4  ;;  %v336_v0 = vld [vmem:[%s2430_s1 + $0x90] sm:$0xff]  ;;  %v335_v12 = vld [vmem:[%s2430_s1 + $0x88] sm:$0xff] }
  0x14   :  { %1268 = vmatprep.subr.mxu1 %v373_v33  ;;  %1234 = vmatpush3.msra.mxu0 %v325_v34  ;;  %v353_v59 = vld [vmem:[%s2430_s1 + $0x118] sm:$0xff]  ;;  %v206_v63 = vrot.slane %v205_v57, 4  ;;  %v368_v1 = vld [vmem:[%s2430_s1 + $0x190] sm:$0xff]  ;;  %v100_v2 = vsel %vm92_vm0, %v60_v52, -inf  ;;  %v107_v4 = vsel %vm92_vm0, %v29_v54, -inf  ;;  %v219_v5 = vsel %vm92_vm0, %v37_v55, -inf }
  0x15   :  { %1269 = vmatpush3.msra.mxu1 %v357_v35  ;;  %1235 = vmatprep.subr.mxu0 %v340_v36  ;;  %v212_v3 = vsel %vm92_vm0, %v68_v53, -inf  ;;  %v320_v6 = vld [vmem:[%s2430_s1 + $0x10] sm:$0xff]  ;;  %v101_v8 = vrot.slane %v100_v2, 4  ;;  %v114_v10 = vsel %vm92_vm0, %v61_v60, -inf  ;;  %v226_v11 = vsel %vm92_vm0, %v69_v61, -inf  ;;  %v367_v13 = vld [vmem:[%s2430_s1 + $0x188] sm:$0xff] }
  0x16   :  { %1270 = vmatprep.subr.mxu1 %v372_v37  ;;  %1236 = vmatpush3.msra.mxu0 %v324_v38  ;;  %v352_v7 = vld [vmem:[%s2430_s1 + $0x110] sm:$0xff]  ;;  %v213_v9 = vrot.slane %v212_v3, 4  ;;  %v115_v14 = vrot.slane %v114_v10, 4  ;;  %v227_v15 = vrot.slane %v226_v11, 4  ;;  %v95_v16 = vmax.f32 %v93_v56, %v94_v62  ;;  %v319_v18 = vld [vmem:[%s2430_s1 + $0x8] sm:$0xff]  ;;  %v334_v24 = vld [vmem:[%s2430_s1 + $0x80] sm:$0xff] }
  0x17   :  { %1271 = vmatpush3.msra.mxu1 %v356_v39  ;;  %1237 = vmatprep.subr.mxu0 %v339_v40  ;;  %v207_v17 = vmax.f32 %v205_v57, %v206_v63  ;;  %v351_v19 = vld [vmem:[%s2430_s1 + $0x108] sm:$0xff]  ;;  %v102_v20 = vmax.f32 %v100_v2, %v101_v8  ;;  %v108_v22 = vrot.slane %v107_v4, 4  ;;  %v220_v23 = vrot.slane %v219_v5, 4  ;;  %v366_v25 = vld [vmem:[%s2430_s1 + $0x180] sm:$0xff]  ;;  %v413_v40 = vld [vmem:[%s2430_s1 + $0x2f8] sm:$0xff] }
  0x18   :  { %1272 = vmatprep.subr.mxu1 %v371_v41  ;;  %1238 = vmatpush3.msra.mxu0 %v323_v42  ;;  %v214_v21 = vmax.f32 %v212_v3, %v213_v9  ;;  %v116_v26 = vmax.f32 %v114_v10, %v115_v14  ;;  %v228_v27 = vmax.f32 %v226_v11, %v227_v15  ;;  %v96_v28 = vrot.slane %v95_v16, 2  ;;  %v318_v30 = vld [vmem:[%s2430_s1] sm:$0xff]  ;;  %v445_v41 = vld [vmem:[%s2430_s1 + $0x3f8] sm:$0xff]  ;;  %v444_v9 = vld [vmem:[%s2430_s1 + $0x3f0] sm:$0xff] }
  0x19   :  { %1273 = vmatpush3.msra.mxu1 %v355_v43  ;;  %1239 = vmatprep.subr.mxu0 %v338_v44  ;;  %v208_v29 = vrot.slane %v207_v17, 2  ;;  %v103_v31 = vrot.slane %v102_v20, 2  ;;  %v350_v33 = vld [vmem:[%s2430_s1 + $0x100] sm:$0xff]  ;;  %v109_v34 = vmax.f32 %v107_v4, %v108_v22  ;;  %v221_v35 = vmax.f32 %v219_v5, %v220_v23  ;;  %v397_v4 = vld [vmem:[%s2430_s1 + $0x278] sm:$0xff]  ;;  %v396_v10 = vld [vmem:[%s2430_s1 + $0x270] sm:$0xff] }
  0x1a   :  { %1274 = vmatprep.subr.mxu1 %v370_v45  ;;  %1240 = vmatpush3.msra.mxu0 %v322_v46  ;;  %v215_v32 = vrot.slane %v214_v21, 2  ;;  %v117_v36 = vrot.slane %v116_v26, 2  ;;  %v229_v37 = vrot.slane %v228_v27, 2  ;;  %v97_v38 = vmax.f32 %v95_v16, %v96_v28  ;;  %v428_v11 = vld [vmem:[%s2430_s1 + $0x370] sm:$0xff]  ;;  %v395_v14 = vld [vmem:[%s2430_s1 + $0x268] sm:$0xff]  ;;  %v410_v16 = vld [vmem:[%s2430_s1 + $0x2e0] sm:$0xff] }
  0x1b   :  { %1275 = vmatpush3.msra.mxu1 %v354_v47  ;;  %1241 = vmatprep.subr.mxu0 %v337_v48  ;;  %v209_v39 = vmax.f32 %v207_v17, %v208_v29  ;;  %v104_v42 = vmax.f32 %v102_v20, %v103_v31  ;;  %v110_v44 = vrot.slane %v109_v34, 2  ;;  %v222_v45 = vrot.slane %v221_v35, 2  ;;  %v427_v15 = vld [vmem:[%s2430_s1 + $0x368] sm:$0xff]  ;;  %v442_v17 = vld [vmem:[%s2430_s1 + $0x3e0] sm:$0xff]  ;;  %v409_v20 = vld [vmem:[%s2430_s1 + $0x2d8] sm:$0xff] }
  0x1c   :  { %1276 = vmatprep.subr.mxu1 %v369_v49  ;;  %1242 = vmatpush3.msra.mxu0 %v321_v58  ;;  %v216_v43 = vmax.f32 %v214_v21, %v215_v32  ;;  %v118_v46 = vmax.f32 %v116_v26, %v117_v36  ;;  %v230_v47 = vmax.f32 %v228_v27, %v229_v37  ;;  %v98_v48 = vrot.slane %v97_v38, 1  ;;  %v441_v21 = vld [vmem:[%s2430_s1 + $0x3d8] sm:$0xff]  ;;  %v30_v22 = vld [vmem:[%s2429_s0 + $0x10] sm:$0x77] }
  0x1d   :  { %1277 = vmatpush3.msra.mxu1 %v353_v59  ;;  %1243 = vmatprep.subr.mxu0 %v336_v0  ;;  %v210_v49 = vrot.slane %v209_v39, 1  ;;  %v105_v50 = vrot.slane %v104_v42, 1  ;;  %v111_v52 = vmax.f32 %v109_v34, %v110_v44  ;;  %v223_v53 = vmax.f32 %v221_v35, %v222_v45  ;;  %v393_v23 = vld [vmem:[%s2430_s1 + $0x258] sm:$0xff]  ;;  %v408_v29 = vld [vmem:[%s2430_s1 + $0x2d0] sm:$0xff] }
  0x1e   :  { %1278 = vmatprep.subr.mxu1 %v368_v1  ;;  %1244 = vmatpush3.msra.mxu0 %v320_v6  ;;  %v217_v51 = vrot.slane %v216_v43, 1  ;;  %v119_v54 = vrot.slane %v118_v46, 1  ;;  %v231_v55 = vrot.slane %v230_v47, 1  ;;  %v99_v56 = vmax.f32 %v97_v38, %v98_v48  ;;  %v429_v6 = vld [vmem:[%s2430_s1 + $0x378] sm:$0xff]  ;;  %v440_v35 = vld [vmem:[%s2430_s1 + $0x3d0] sm:$0xff]  ;;  %v391_v48 = vld [vmem:[%s2430_s1 + $0x248] sm:$0xff] }
  0x1f   :  { %1279 = vmatpush3.msra.mxu1 %v352_v7  ;;  %1245 = vmatprep.subr.mxu0 %v335_v12  ;;  %v211_v57 = vmax.f32 %v209_v39, %v210_v49  ;;  %v106_v58 = vmax.f32 %v104_v42, %v105_v50  ;;  %v112_v60 = vrot.slane %v111_v52, 1  ;;  %v224_v61 = vrot.slane %v223_v53, 1  ;;  %v412_v7 = vld [vmem:[%s2430_s1 + $0x2f0] sm:$0xff]  ;;  %v411_v12 = vld [vmem:[%s2430_s1 + $0x2e8] sm:$0xff]  ;;  %v31_v27 = vld [vmem:[%s2429_s0 + $0x18] sm:$0x77] }
  0x20   :  { %1280 = vmatprep.subr.mxu1 %v367_v13  ;;  %1246 = vmatpush3.msra.mxu0 %v319_v18  ;;  %v218_v59 = vmax.f32 %v216_v43, %v217_v51  ;;  %v120_v62 = vmax.f32 %v118_v46, %v119_v54  ;;  %v232_v63 = vmax.f32 %v230_v47, %v231_v55  ;;  %v443_v13 = vld [vmem:[%s2430_s1 + $0x3e8] sm:$0xff]  ;;  %v394_v18 = vld [vmem:[%s2430_s1 + $0x260] sm:$0xff]  ;;  %v121_v26 = vsel %vm92_vm0, %v30_v22, -inf  ;;  %v425_v28 = vld [vmem:[%s2430_s1 + $0x358] sm:$0xff] }
  0x21   :  { %1281 = vmatpush3.msra.mxu1 %v351_v19  ;;  %1247 = vmatprep.subr.mxu0 %v334_v24  ;;  %v607_v0 = vsel %vm606_vm1, %v211_v57, %v99_v56  ;;  %v113_v2 = vmax.f32 %v111_v52, %v112_v60  ;;  %v225_v3 = vmax.f32 %v223_v53, %v224_v61  ;;  %v426_v19 = vld [vmem:[%s2430_s1 + $0x360] sm:$0xff]  ;;  %v38_v24 = vld [vmem:[%s2429_s0 + $0x50] sm:$0x77]  ;;  %v122_v31 = vrot.slane %v121_v26, 4  ;;  %v407_v42 = vld [vmem:[%s2430_s1 + $0x2c8] sm:$0xff] }
  0x22   :  { %1282 = vmatprep.subr.mxu1 %v366_v25  ;;  %1248 = vmatpush3.msra.mxu0 %v318_v30  ;;  %v608_v1 = vsel %vm606_vm1, %v218_v59, %v106_v58  ;;  %v610_v5 = vsel %vm606_vm1, %v232_v63, %v120_v62  ;;  %v62_v25 = vcombine.high %v30_v22, %v30_v22  ;;  %v233_v32 = vsel %vm92_vm0, %v38_v24, -inf  ;;  %v392_v36 = vld [vmem:[%s2430_s1 + $0x250] sm:$0xff]  ;;  %v439_v47 = vld [vmem:[%s2430_s1 + $0x3c8] sm:$0xff]  ;;  %v406_v54 = vld [vmem:[%s2430_s1 + $0x2c0] sm:$0xff] }
  0x23   :  { %1283 = vmatpush3.msra.mxu1 %v350_v33  ;;  %1287 = vmatprep.subr.mxu0 %v413_v40  ;;  %v609_v8 = vsel %vm606_vm1, %v225_v3, %v113_v2  ;;  %v70_v30 = vcombine.high %v38_v24, %v38_v24  ;;  %v39_v33 = vld [vmem:[%s2429_s0 + $0x58] sm:$0x77]  ;;  %v63_v34 = vcombine.high %v31_v27, %v31_v27  ;;  %v234_v38 = vrot.slane %v233_v32, 4  ;;  %v423_v53 = vld [vmem:[%s2430_s1 + $0x348] sm:$0xff]  ;;  %v438_v58 = vld [vmem:[%s2430_s1 + $0x3c0] sm:$0xff] }
  0x24   :  { %1322 = vmatprep.subr.mxu1 %v445_v41  ;;  %703 = vmatprep.mubr.f32.mxu0 %v608_v1  ;;  %v128_v37 = vsel %vm92_vm0, %v62_v25, -inf  ;;  %v71_v39 = vcombine.high %v39_v33, %v39_v33  ;;  %v135_v40 = vsel %vm92_vm0, %v31_v27, -inf  ;;  %v424_v41 = vld [vmem:[%s2430_s1 + $0x350] sm:$0xff]  ;;  %v123_v45 = vmax.f32 %v121_v26, %v122_v31  ;;  %v390_v59 = vld [vmem:[%s2430_s1 + $0x240] sm:$0xff]  ;;  %v387_v24 = vld [vmem:[%s2430_s1 + $0x228] sm:$0xff] }
  0x25   :  { %773 = vmatprep.mubr.f32.mxu1 %v610_v5  ;;  %704 = vmatmul.mubr.f32.vlgmr.msra.gmra.mxu0 %v607_v0  ;;  %v129_v43 = vrot.slane %v128_v37, 4  ;;  %v240_v44 = vsel %vm92_vm0, %v70_v30, -inf  ;;  %v142_v46 = vsel %vm92_vm0, %v63_v34, -inf  ;;  %v235_v50 = vmax.f32 %v233_v32, %v234_v38  ;;  %v422_v63 = vld [vmem:[%s2430_s1 + $0x340] sm:$0xff]  ;;  %v405_v0 = vld [vmem:[%s2430_s1 + $0x2b8] sm:$0xff] }
  0x26   :  { %774 = vmatmul.mubr.f32.vlgmr.msra.gmra.mxu1 %v609_v8  ;;  %1288 = vmatpush3.msra.mxu0 %v397_v4  ;;  %v241_v49 = vrot.slane %v240_v44, 4  ;;  %v143_v51 = vrot.slane %v142_v46, 4  ;;  %v254_v52 = vsel %vm92_vm0, %v71_v39, -inf  ;;  %v136_v57 = vrot.slane %v135_v40, 4  ;;  %v437_v5 = vld [vmem:[%s2430_s1 + $0x3b8] sm:$0xff]  ;;  %v402_v30 = vld [vmem:[%s2430_s1 + $0x2a0] sm:$0xff] }
  0x27   :  { %1323 = vmatpush3.msra.mxu1 %v429_v6  ;;  %1289 = vmatprep.subr.mxu0 %v412_v7  ;;  %v130_v55 = vmax.f32 %v128_v37, %v129_v43  ;;  %v255_v56 = vrot.slane %v254_v52, 4  ;;  %v247_v62 = vsel %vm92_vm0, %v39_v33, -inf  ;;  %v124_v2 = vrot.slane %v123_v45, 2  ;;  %v389_v6 = vld [vmem:[%s2430_s1 + $0x238] sm:$0xff]  ;;  %v434_v31 = vld [vmem:[%s2430_s1 + $0x3a0] sm:$0xff] }
  0x28   :  { %1324 = vmatprep.subr.mxu1 %v444_v9  ;;  %1290 = vmatpush3.msra.mxu0 %v396_v10  ;;  %v242_v60 = vmax.f32 %v240_v44, %v241_v49  ;;  %v144_v61 = vmax.f32 %v142_v46, %v143_v51  ;;  %v137_v4 = vmax.f32 %v135_v40, %v136_v57  ;;  %v236_v8 = vrot.slane %v235_v50, 2  ;;  %v386_v32 = vld [vmem:[%s2430_s1 + $0x220] sm:$0xff]  ;;  %v433_v40 = vld [vmem:[%s2430_s1 + $0x398] sm:$0xff]  ;;  %v400_v46 = vld [vmem:[%s2430_s1 + $0x290] sm:$0xff] }
  0x29   :  { %1325 = vmatpush3.msra.mxu1 %v428_v11  ;;  %1291 = vmatprep.subr.mxu0 %v411_v12  ;;  %v131_v1 = vrot.slane %v130_v55, 2  ;;  %v256_v3 = vmax.f32 %v254_v52, %v255_v56  ;;  %v248_v10 = vrot.slane %v247_v62, 4  ;;  %v421_v11 = vld [vmem:[%s2430_s1 + $0x338] sm:$0xff]  ;;  %v404_v12 = vld [vmem:[%s2430_s1 + $0x2b0] sm:$0xff]  ;;  %v125_v22 = vmax.f32 %v123_v45, %v124_v2  ;;  %v418_v34 = vld [vmem:[%s2430_s1 + $0x320] sm:$0xff] }
  0x2a   :  { %1326 = vmatprep.subr.mxu1 %v443_v13  ;;  %1292 = vmatpush3.msra.mxu0 %v395_v14  ;;  %v243_v7 = vrot.slane %v242_v60, 2  ;;  %v145_v9 = vrot.slane %v144_v61, 2  ;;  %v436_v14 = vld [vmem:[%s2430_s1 + $0x3b0] sm:$0xff]  ;;  %v237_v25 = vmax.f32 %v235_v50, %v236_v8  ;;  %v417_v45 = vld [vmem:[%s2430_s1 + $0x318] sm:$0xff]  ;;  %v399_v52 = vld [vmem:[%s2430_s1 + $0x288] sm:$0xff] }
  0x2b   :  { %1327 = vmatpush3.msra.mxu1 %v427_v15  ;;  %1293 = vmatprep.subr.mxu0 %v410_v16  ;;  %v257_v13 = vrot.slane %v256_v3, 2  ;;  %v388_v15 = vld [vmem:[%s2430_s1 + $0x230] sm:$0xff]  ;;  %v138_v16 = vrot.slane %v137_v4, 2  ;;  %v126_v38 = vrot.slane %v125_v22, 1  ;;  %v431_v56 = vld [vmem:[%s2430_s1 + $0x388] sm:$0xff] }
  0x2c   :  { %1328 = vmatprep.subr.mxu1 %v442_v17  ;;  %1294 = vmatpush3.msra.mxu0 %v394_v18  ;;  %v249_v17 = vmax.f32 %v247_v62, %v248_v10  ;;  %v420_v18 = vld [vmem:[%s2430_s1 + $0x330] sm:$0xff]  ;;  %v146_v26 = vmax.f32 %v144_v61, %v145_v9  ;;  %v383_v57 = vld [vmem:[%s2430_s1 + $0x208] sm:$0xff]  ;;  %v398_v62 = vld [vmem:[%s2430_s1 + $0x280] sm:$0xff] }
  0x2d   :  { %1329 = vmatpush3.msra.mxu1 %v426_v19  ;;  %1295 = vmatprep.subr.mxu0 %v409_v20  ;;  %v403_v19 = vld [vmem:[%s2430_s1 + $0x2a8] sm:$0xff]  ;;  %v132_v20 = vmax.f32 %v130_v55, %v131_v1  ;;  %v258_v27 = vmax.f32 %v256_v3, %v257_v13  ;;  %v139_v33 = vmax.f32 %v137_v4, %v138_v16  ;;  %v416_v51 = vld [vmem:[%s2430_s1 + $0x310] sm:$0xff]  ;;  %v414_v4 = vld [vmem:[%s2430_s1 + $0x300] sm:$0xff] }
  0x2e   :  { %1330 = vmatprep.subr.mxu1 %v441_v21  ;;  %1296 = vmatpush3.msra.mxu0 %v393_v23  ;;  %v244_v21 = vmax.f32 %v242_v60, %v243_v7  ;;  %v435_v23 = vld [vmem:[%s2430_s1 + $0x3a8] sm:$0xff]  ;;  %v147_v43 = vrot.slane %v146_v26, 1  ;;  %v127_v55 = vmax.f32 %v125_v22, %v126_v38  ;;  %v460_v22 = vld [vmem:[%s2430_s1 + $0x470] sm:$0xff]  ;;  %v490_v38 = vld [vmem:[%s2430_s1 + $0x560] sm:$0xff] }
  0x2f   :  { %1331 = vmatpush3.msra.mxu1 %v425_v28  ;;  %1297 = vmatprep.subr.mxu0 %v408_v29  ;;  %v250_v28 = vrot.slane %v249_v17, 2  ;;  %v419_v29 = vld [vmem:[%s2430_s1 + $0x328] sm:$0xff]  ;;  %v259_v44 = vrot.slane %v258_v27, 1  ;;  %v140_v49 = vrot.slane %v139_v33, 1 }
  0x30   :  { %1332 = vmatprep.subr.mxu1 %v440_v35  ;;  %1298 = vmatpush3.msra.mxu0 %v392_v36  ;;  %v401_v35 = vld [vmem:[%s2430_s1 + $0x298] sm:$0xff]  ;;  %v133_v36 = vrot.slane %v132_v20, 1  ;;  %v245_v37 = vrot.slane %v244_v21, 1  ;;  %v415_v61 = vld [vmem:[%s2430_s1 + $0x308] sm:$0xff] }
  0x31   :  { %1333 = vmatpush3.msra.mxu1 %v424_v41  ;;  %1299 = vmatprep.subr.mxu0 %v407_v42  ;;  %v251_v39 = vmax.f32 %v249_v17, %v250_v28  ;;  %v385_v41 = vld [vmem:[%s2430_s1 + $0x218] sm:$0xff]  ;;  %v238_v42 = vrot.slane %v237_v25, 1  ;;  %v260_v60 = vmax.f32 %v258_v27, %v259_v44  ;;  %v141_v1 = vmax.f32 %v139_v33, %v140_v49  ;;  %v33_v9 = vld [vmem:[%s2429_s0 + $0x28] sm:$0x77] }
  0x32   :  { %1334 = vmatprep.subr.mxu1 %v439_v47  ;;  %1300 = vmatpush3.msra.mxu0 %v391_v48  ;;  %v432_v47 = vld [vmem:[%s2430_s1 + $0x390] sm:$0xff]  ;;  %v41_v10 = vld [vmem:[%s2429_s0 + $0x68] sm:$0x77]  ;;  %v493_v17 = vld [vmem:[%s2430_s1 + $0x578] sm:$0xff] }
  0x33   :  { %1335 = vmatpush3.msra.mxu1 %v423_v53  ;;  %1301 = vmatprep.subr.mxu0 %v406_v54  ;;  %v384_v48 = vld [vmem:[%s2430_s1 + $0x210] sm:$0xff]  ;;  %v252_v50 = vrot.slane %v251_v39, 1  ;;  %v134_v53 = vmax.f32 %v132_v20, %v133_v36  ;;  %v246_v54 = vmax.f32 %v244_v21, %v245_v37  ;;  %v73_v20 = vcombine.high %v41_v10, %v41_v10  ;;  %v459_v27 = vld [vmem:[%s2430_s1 + $0x468] sm:$0xff]  ;;  %v458_v36 = vld [vmem:[%s2430_s1 + $0x460] sm:$0xff] }
  0x34   :  { %1336 = vmatprep.subr.mxu1 %v438_v58  ;;  %1302 = vmatpush3.msra.mxu0 %v390_v59  ;;  %v239_v58 = vmax.f32 %v237_v25, %v238_v42  ;;  %v148_v59 = vmax.f32 %v146_v26, %v147_v43  ;;  %v508_v21 = vld [vmem:[%s2430_s1 + $0x5f0] sm:$0xff]  ;;  %v507_v26 = vld [vmem:[%s2430_s1 + $0x5e8] sm:$0xff]  ;;  %v163_v42 = vsel %vm92_vm0, %v33_v9, -inf  ;;  %v275_v43 = vsel %vm92_vm0, %v41_v10, -inf  ;;  %v505_v44 = vld [vmem:[%s2430_s1 + $0x5d8] sm:$0xff] }
  0x35   :  { %1337 = vmatpush3.msra.mxu1 %v422_v63  ;;  %1303 = vmatprep.subr.mxu0 %v405_v0  ;;  %v430_v63 = vld [vmem:[%s2430_s1 + $0x380] sm:$0xff]  ;;  %v253_v2 = vmax.f32 %v251_v39, %v252_v50  ;;  %v612_v3 = vsel %vm606_vm1, %v246_v54, %v134_v53  ;;  %v473_v39 = vld [vmem:[%s2430_s1 + $0x4d8] sm:$0xff]  ;;  %v472_v50 = vld [vmem:[%s2430_s1 + $0x4d0] sm:$0xff]  ;;  %v164_v53 = vrot.slane %v163_v42, 4  ;;  %v276_v54 = vrot.slane %v275_v43, 4 }
  0x36   :  { %1338 = vmatprep.subr.mxu1 %v437_v5  ;;  %1304 = vmatpush3.msra.mxu0 %v389_v6  ;;  %v382_v0 = vld [vmem:[%s2430_s1 + $0x200] sm:$0xff]  ;;  %v611_v7 = vsel %vm606_vm1, %v239_v58, %v127_v55  ;;  %v614_v8 = vsel %vm606_vm1, %v260_v60, %v148_v59  ;;  %v489_v49 = vld [vmem:[%s2430_s1 + $0x558] sm:$0xff]  ;;  %v488_v55 = vld [vmem:[%s2430_s1 + $0x550] sm:$0xff] }
  0x37   :  { %1339 = vmatpush3.msra.mxu1 %v421_v11  ;;  %1305 = vmatprep.subr.mxu0 %v404_v12  ;;  %v32_v5 = vld [vmem:[%s2429_s0 + $0x20] sm:$0x77]  ;;  %v477_v11 = vld [vmem:[%s2430_s1 + $0x4f8] sm:$0xff]  ;;  %v613_v13 = vsel %vm606_vm1, %v253_v2, %v141_v1  ;;  %v503_v60 = vld [vmem:[%s2430_s1 + $0x5c8] sm:$0xff] }
  0x38   :  { %1340 = vmatprep.subr.mxu1 %v436_v14  ;;  %1306 = vmatpush3.msra.mxu0 %v388_v15  ;;  %v40_v6 = vld [vmem:[%s2429_s0 + $0x60] sm:$0x77]  ;;  %v509_v12 = vld [vmem:[%s2430_s1 + $0x5f8] sm:$0xff]  ;;  %v64_v15 = vcombine.high %v32_v5, %v32_v5  ;;  %v149_v25 = vsel %vm92_vm0, %v32_v5, -inf  ;;  %v487_v1 = vld [vmem:[%s2430_s1 + $0x548] sm:$0xff]  ;;  %v165_v5 = vmax.f32 %v163_v42, %v164_v53 }
  0x39   :  { %1341 = vmatpush3.msra.mxu1 %v420_v18  ;;  %1307 = vmatprep.subr.mxu0 %v403_v19  ;;  %v461_v14 = vld [vmem:[%s2430_s1 + $0x478] sm:$0xff]  ;;  %v72_v16 = vcombine.high %v40_v6, %v40_v6  ;;  %v476_v18 = vld [vmem:[%s2430_s1 + $0x4f0] sm:$0xff]  ;;  %v65_v19 = vcombine.high %v33_v9, %v33_v9  ;;  %v150_v37 = vrot.slane %v149_v25, 4  ;;  %v470_v2 = vld [vmem:[%s2430_s1 + $0x4c0] sm:$0xff] }
  0x3a   :  { %1342 = vmatprep.subr.mxu1 %v435_v23  ;;  %1308 = vmatpush3.msra.mxu0 %v387_v24  ;;  %v492_v23 = vld [vmem:[%s2430_s1 + $0x570] sm:$0xff]  ;;  %v475_v24 = vld [vmem:[%s2430_s1 + $0x4e8] sm:$0xff]  ;;  %v156_v28 = vsel %vm92_vm0, %v64_v15, -inf }
  0x3b   :  { %1343 = vmatpush3.msra.mxu1 %v419_v29  ;;  %1309 = vmatprep.subr.mxu0 %v402_v30  ;;  %v268_v29 = vsel %vm92_vm0, %v72_v16, -inf  ;;  %v491_v30 = vld [vmem:[%s2430_s1 + $0x568] sm:$0xff]  ;;  %v170_v33 = vsel %vm92_vm0, %v65_v19, -inf  ;;  %v151_v59 = vmax.f32 %v149_v25, %v150_v37  ;;  %v500_v19 = vld [vmem:[%s2430_s1 + $0x5b0] sm:$0xff] }
  0x3c   :  { %1344 = vmatprep.subr.mxu1 %v434_v31  ;;  %1310 = vmatpush3.msra.mxu0 %v386_v32  ;;  %v474_v31 = vld [vmem:[%s2430_s1 + $0x4e0] sm:$0xff]  ;;  %v261_v32 = vsel %vm92_vm0, %v40_v6, -inf  ;;  %v277_v6 = vmax.f32 %v275_v43, %v276_v54 }
  0x3d   :  { %1345 = vmatpush3.msra.mxu1 %v418_v34  ;;  %1311 = vmatprep.subr.mxu0 %v401_v35  ;;  %v282_v34 = vsel %vm92_vm0, %v73_v20, -inf  ;;  %v506_v35 = vld [vmem:[%s2430_s1 + $0x5e0] sm:$0xff]  ;;  %v452_v20 = vld [vmem:[%s2430_s1 + $0x430] sm:$0xff] }
  0x3e   :  { %1346 = vmatprep.subr.mxu1 %v433_v40  ;;  %1312 = vmatpush3.msra.mxu0 %v385_v41  ;;  %v157_v40 = vrot.slane %v156_v28, 4  ;;  %v269_v41 = vrot.slane %v268_v29, 4 }
  0x3f   :  { %1347 = vmatpush3.msra.mxu1 %v417_v45  ;;  %1313 = vmatprep.subr.mxu0 %v400_v46  ;;  %v457_v45 = vld [vmem:[%s2430_s1 + $0x458] sm:$0xff]  ;;  %v262_v46 = vrot.slane %v261_v32, 4 }
  0x40   :  { %1348 = vmatprep.subr.mxu1 %v432_v47  ;;  %1314 = vmatpush3.msra.mxu0 %v384_v48  ;;  %v171_v47 = vrot.slane %v170_v33, 4  ;;  %v283_v48 = vrot.slane %v282_v34, 4  ;;  %v270_v58 = vmax.f32 %v268_v29, %v269_v41  ;;  %v451_v29 = vld [vmem:[%s2430_s1 + $0x428] sm:$0xff] }
  0x41   :  { %1349 = vmatpush3.msra.mxu1 %v416_v51  ;;  %1315 = vmatprep.subr.mxu0 %v399_v52  ;;  %v504_v51 = vld [vmem:[%s2430_s1 + $0x5d0] sm:$0xff] }
  0x42   :  { %1350 = vmatprep.subr.mxu1 %v431_v56  ;;  %1316 = vmatpush3.msra.mxu0 %v383_v57  ;;  %v456_v52 = vld [vmem:[%s2430_s1 + $0x450] sm:$0xff]  ;;  %v471_v56 = vld [vmem:[%s2430_s1 + $0x4c8] sm:$0xff]  ;;  %v158_v57 = vmax.f32 %v156_v28, %v157_v40  ;;  %v271_v10 = vrot.slane %v270_v58, 2 }
  0x43   :  { %1351 = vmatpush3.msra.mxu1 %v415_v61  ;;  %1317 = vmatprep.subr.mxu0 %v398_v62  ;;  %v455_v61 = vld [vmem:[%s2430_s1 + $0x448] sm:$0xff]  ;;  %v263_v62 = vmax.f32 %v261_v32, %v262_v46 }
  0x44   :  { %1352 = vmatprep.subr.mxu1 %v430_v63  ;;  %1318 = vmatpush3.msra.mxu0 %v382_v0  ;;  %v172_v63 = vmax.f32 %v170_v33, %v171_v47  ;;  %v284_v0 = vmax.f32 %v282_v34, %v283_v48  ;;  %v159_v9 = vrot.slane %v158_v57, 2  ;;  %v499_v28 = vld [vmem:[%s2430_s1 + $0x5a8] sm:$0xff]  ;;  %v466_v34 = vld [vmem:[%s2430_s1 + $0x4a0] sm:$0xff] }
  0x45   :  { %843 = vmatprep.mubr.f32.mxu0 %v612_v3  ;;  %1353 = vmatpush3.msra.mxu1 %v414_v4  ;;  %v502_v3 = vld [vmem:[%s2430_s1 + $0x5c0] sm:$0xff]  ;;  %v483_v33 = vld [vmem:[%s2430_s1 + $0x528] sm:$0xff] }
  0x46   :  { %844 = vmatmul.mubr.f32.vlgmr.msra.gmra.mxu0 %v611_v7  ;;  %913 = vmatprep.mubr.f32.mxu1 %v614_v8  ;;  %v454_v4 = vld [vmem:[%s2430_s1 + $0x440] sm:$0xff]  ;;  %v469_v8 = vld [vmem:[%s2430_s1 + $0x4b8] sm:$0xff]  ;;  %v173_v15 = vrot.slane %v172_v63, 2  ;;  %v285_v16 = vrot.slane %v284_v0, 2  ;;  %v160_v25 = vmax.f32 %v158_v57, %v159_v9 }
  0x47   :  { %1357 = vmatprep.subr.mxu0 %v477_v11  ;;  %1392 = vmatprep.subr.mxu1 %v509_v12  ;;  %v486_v7 = vld [vmem:[%s2430_s1 + $0x540] sm:$0xff]  ;;  %v152_v11 = vrot.slane %v151_v59, 2  ;;  %v501_v12 = vld [vmem:[%s2430_s1 + $0x5b8] sm:$0xff] }
  0x48   :  { %914 = vmatmul.mubr.f32.vlgmr.msra.gmra.mxu1 %v613_v13  ;;  %1358 = vmatpush3.msra.mxu0 %v461_v14  ;;  %v453_v13 = vld [vmem:[%s2430_s1 + $0x438] sm:$0xff]  ;;  %v264_v14 = vrot.slane %v263_v62, 2  ;;  %v286_v32 = vmax.f32 %v284_v0, %v285_v16 }
  0x49   :  { %1393 = vmatpush3.msra.mxu1 %v493_v17  ;;  %1359 = vmatprep.subr.mxu0 %v476_v18  ;;  %v485_v17 = vld [vmem:[%s2430_s1 + $0x538] sm:$0xff]  ;;  %v468_v18 = vld [vmem:[%s2430_s1 + $0x4b0] sm:$0xff] }
  0x4a   :  { %1394 = vmatprep.subr.mxu1 %v508_v21  ;;  %1360 = vmatpush3.msra.mxu0 %v460_v22  ;;  %v166_v21 = vrot.slane %v165_v5, 2  ;;  %v278_v22 = vrot.slane %v277_v6, 2 }
  0x4b   :  { %1395 = vmatpush3.msra.mxu1 %v492_v23  ;;  %1361 = vmatprep.subr.mxu0 %v475_v24  ;;  %v484_v23 = vld [vmem:[%s2430_s1 + $0x530] sm:$0xff]  ;;  %v467_v24 = vld [vmem:[%s2430_s1 + $0x4a8] sm:$0xff] }
  0x4c   :  { %1396 = vmatprep.subr.mxu1 %v507_v26  ;;  %1362 = vmatpush3.msra.mxu0 %v459_v27  ;;  %v272_v26 = vmax.f32 %v270_v58, %v271_v10  ;;  %v153_v27 = vmax.f32 %v151_v59, %v152_v11 }
  0x4d   :  { %1397 = vmatpush3.msra.mxu1 %v491_v30  ;;  %1363 = vmatprep.subr.mxu0 %v474_v31  ;;  %v265_v30 = vmax.f32 %v263_v62, %v264_v14  ;;  %v174_v31 = vmax.f32 %v172_v63, %v173_v15 }
  0x4e   :  { %1398 = vmatprep.subr.mxu1 %v506_v35  ;;  %1364 = vmatpush3.msra.mxu0 %v458_v36 }
  0x4f   :  { %1399 = vmatpush3.msra.mxu1 %v490_v38  ;;  %1365 = vmatprep.subr.mxu0 %v473_v39 }
  0x50   :  { %1400 = vmatprep.subr.mxu1 %v505_v44  ;;  %1366 = vmatpush3.msra.mxu0 %v457_v45 }
  0x51   :  { %1401 = vmatpush3.msra.mxu1 %v489_v49  ;;  %1367 = vmatprep.subr.mxu0 %v472_v50 }
  0x52   :  { %1402 = vmatprep.subr.mxu1 %v504_v51  ;;  %1368 = vmatpush3.msra.mxu0 %v456_v52 }
  0x53   :  { %1403 = vmatpush3.msra.mxu1 %v488_v55  ;;  %1369 = vmatprep.subr.mxu0 %v471_v56 }
  0x54   :  { %1404 = vmatprep.subr.mxu1 %v503_v60  ;;  %1370 = vmatpush3.msra.mxu0 %v455_v61 }
  0x55   :  { %1405 = vmatpush3.msra.mxu1 %v487_v1  ;;  %1371 = vmatprep.subr.mxu0 %v470_v2 }
  0x56   :  { %1406 = vmatprep.subr.mxu1 %v502_v3  ;;  %1372 = vmatpush3.msra.mxu0 %v454_v4 }
  0x57   :  { %1407 = vmatpush3.msra.mxu1 %v486_v7  ;;  %1373 = vmatprep.subr.mxu0 %v469_v8 }
  0x58   :  { %1408 = vmatprep.subr.mxu1 %v501_v12  ;;  %1374 = vmatpush3.msra.mxu0 %v453_v13 }
  0x59   :  { %1409 = vmatpush3.msra.mxu1 %v485_v17  ;;  %1375 = vmatprep.subr.mxu0 %v468_v18 }
  0x5a   :  { %1410 = vmatprep.subr.mxu1 %v500_v19  ;;  %1376 = vmatpush3.msra.mxu0 %v452_v20 }
  0x5b   :  { %8 = vsyncpa [#allocation3], 0  ;;  %1411 = vmatpush3.msra.mxu1 %v484_v23  ;;  %1377 = vmatprep.subr.mxu0 %v467_v24  ;;  %v498_v35 = vld [vmem:[%s2430_s1 + $0x5a0] sm:$0xff]  ;;  %v167_v37 = vmax.f32 %v165_v5, %v166_v21  ;;  %v279_v38 = vmax.f32 %v277_v6, %v278_v22  ;;  %v465_v40 = vld [vmem:[%s2430_s1 + $0x498] sm:$0xff]  ;;  %v161_v41 = vrot.slane %v160_v25, 1  ;;  %v273_v42 = vrot.slane %v272_v26, 1 }
  0x5c   :  { %v450_v36 = vld [vmem:[%s2430_s1 + $0x420] sm:$0xff]  ;;  %1412 = vmatprep.subr.mxu1 %v499_v28  ;;  %1378 = vmatpush3.msra.mxu0 %v451_v29  ;;  %v154_v43 = vrot.slane %v153_v27, 1  ;;  %v497_v44 = vld [vmem:[%s2430_s1 + $0x598] sm:$0xff]  ;;  %v266_v46 = vrot.slane %v265_v30, 1  ;;  %v175_v47 = vrot.slane %v174_v31, 1  ;;  %v287_v48 = vrot.slane %v286_v32, 1 }
  0x5d   :  { %v482_v39 = vld [vmem:[%s2430_s1 + $0x520] sm:$0xff]  ;;  %1413 = vmatpush3.msra.mxu1 %v483_v33  ;;  %1379 = vmatprep.subr.mxu0 %v466_v34  ;;  %v449_v45 = vld [vmem:[%s2430_s1 + $0x418] sm:$0xff]  ;;  %v464_v50 = vld [vmem:[%s2430_s1 + $0x490] sm:$0xff]  ;;  %v168_v53 = vrot.slane %v167_v37, 1  ;;  %v280_v54 = vrot.slane %v279_v38, 1  ;;  %v162_v57 = vmax.f32 %v160_v25, %v161_v41  ;;  %v274_v58 = vmax.f32 %v272_v26, %v273_v42 }
  0x5e   :  { %1414 = vmatprep.subr.mxu1 %v498_v35  ;;  %1380 = vmatpush3.msra.mxu0 %v450_v36  ;;  %v481_v49 = vld [vmem:[%s2430_s1 + $0x518] sm:$0xff]  ;;  %v496_v51 = vld [vmem:[%s2430_s1 + $0x590] sm:$0xff]  ;;  %v463_v56 = vld [vmem:[%s2430_s1 + $0x488] sm:$0xff]  ;;  %v155_v59 = vmax.f32 %v153_v27, %v154_v43  ;;  %v267_v62 = vmax.f32 %v265_v30, %v266_v46  ;;  %v176_v63 = vmax.f32 %v174_v31, %v175_v47  ;;  %vm26_vm2 = vcmask 254976  }
  0x5f   :  { %1415 = vmatpush3.msra.mxu1 %v482_v39  ;;  %1381 = vmatprep.subr.mxu0 %v465_v40  ;;  %v448_v52 = vld [vmem:[%s2430_s1 + $0x410] sm:$0xff]  ;;  %v495_v60 = vld [vmem:[%s2430_s1 + $0x588] sm:$0xff]  ;;  %v288_v0 = vmax.f32 %v286_v32, %v287_v48  ;;  %v462_v2 = vld [vmem:[%s2430_s1 + $0x480] sm:$0xff]  ;;  %v169_v5 = vmax.f32 %v167_v37, %v168_v53  ;;  %v281_v6 = vmax.f32 %v279_v38, %v280_v54 }
  0x60   :  { %1416 = vmatprep.subr.mxu1 %v497_v44  ;;  %1382 = vmatpush3.msra.mxu0 %v449_v45  ;;  %v480_v55 = vld [vmem:[%s2430_s1 + $0x510] sm:$0xff]  ;;  %v447_v61 = vld [vmem:[%s2430_s1 + $0x408] sm:$0xff]  ;;  %v494_v3 = vld [vmem:[%s2430_s1 + $0x580] sm:$0xff]  ;;  %v616_v7 = vsel %vm606_vm1, %v274_v58, %v162_v57  ;;  %v615_v11 = vsel %vm606_vm1, %v267_v62, %v155_v59 }
  0x61   :  { %1417 = vmatpush3.msra.mxu1 %v481_v49  ;;  %1383 = vmatprep.subr.mxu0 %v464_v50  ;;  %v479_v1 = vld [vmem:[%s2430_s1 + $0x508] sm:$0xff]  ;;  %v446_v4 = vld [vmem:[%s2430_s1 + $0x400] sm:$0xff]  ;;  %v34_v9 = vld [vmem:[%s2429_s0 + $0x30] sm:$0x77]  ;;  %v618_v12 = vsel %vm606_vm1, %v288_v0, %v176_v63  ;;  %v617_v17 = vsel %vm606_vm1, %v281_v6, %v169_v5 }
  0x62   :  { %1418 = vmatprep.subr.mxu1 %v496_v51  ;;  %1384 = vmatpush3.msra.mxu0 %v448_v52  ;;  %v478_v8 = vld [vmem:[%s2430_s1 + $0x500] sm:$0xff]  ;;  %v42_v10 = vld [vmem:[%s2429_s0 + $0x70] sm:$0x77]  ;;  %v35_v13 = vld [vmem:[%s2429_s0 + $0x38] sm:$0x77]  ;;  %v66_v19 = vcombine.high %v34_v9, %v34_v9  ;;  %v177_v33 = vsel %vm92_vm0, %v34_v9, -inf }
  0x63   :  { %1419 = vmatpush3.msra.mxu1 %v480_v55  ;;  %1385 = vmatprep.subr.mxu0 %v463_v56  ;;  %v43_v14 = vld [vmem:[%s2429_s0 + $0x78] sm:$0x77]  ;;  %v74_v20 = vcombine.high %v42_v10, %v42_v10  ;;  %v540_v22 = vld [vmem:[%s2430_s1 + $0x6f0] sm:$0xff]  ;;  %v67_v23 = vcombine.high %v35_v13, %v35_v13  ;;  %v539_v28 = vld [vmem:[%s2430_s1 + $0x6e8] sm:$0xff]  ;;  %v289_v38 = vsel %vm92_vm0, %v42_v10, -inf  ;;  %v191_v41 = vsel %vm92_vm0, %v35_v13, -inf }
  0x64   :  { %1420 = vmatprep.subr.mxu1 %v495_v60  ;;  %1386 = vmatpush3.msra.mxu0 %v447_v61  ;;  %v541_v15 = vld [vmem:[%s2430_s1 + $0x6f8] sm:$0xff]  ;;  %v75_v24 = vcombine.high %v43_v14, %v43_v14  ;;  %v572_v25 = vld [vmem:[%s2430_s1 + $0x7f0] sm:$0xff]  ;;  %v571_v29 = vld [vmem:[%s2430_s1 + $0x7e8] sm:$0xff]  ;;  %v184_v31 = vsel %vm92_vm0, %v66_v19, -inf  ;;  %v303_v42 = vsel %vm92_vm0, %v43_v14, -inf  ;;  %v178_v47 = vrot.slane %v177_v33, 4 }
  0x65   :  { %1421 = vmatpush3.msra.mxu1 %v479_v1  ;;  %1387 = vmatprep.subr.mxu0 %v462_v2  ;;  %v573_v16 = vld [vmem:[%s2430_s1 + $0x7f8] sm:$0xff]  ;;  %v524_v26 = vld [vmem:[%s2430_s1 + $0x670] sm:$0xff]  ;;  %v523_v30 = vld [vmem:[%s2430_s1 + $0x668] sm:$0xff]  ;;  %v296_v32 = vsel %vm92_vm0, %v74_v20, -inf  ;;  %v198_v36 = vsel %vm92_vm0, %v67_v23, -inf  ;;  %v185_v45 = vrot.slane %v184_v31, 4 }
  0x66   :  { %1422 = vmatprep.subr.mxu1 %v494_v3  ;;  %1388 = vmatpush3.msra.mxu0 %v446_v4  ;;  %v525_v18 = vld [vmem:[%s2430_s1 + $0x678] sm:$0xff]  ;;  %v556_v27 = vld [vmem:[%s2430_s1 + $0x770] sm:$0xff]  ;;  %v555_v34 = vld [vmem:[%s2430_s1 + $0x768] sm:$0xff]  ;;  %v310_v37 = vsel %vm92_vm0, %v75_v24, -inf  ;;  %v297_v46 = vrot.slane %v296_v32, 4  ;;  %v199_v50 = vrot.slane %v198_v36, 4  ;;  %v179_v63 = vmax.f32 %v177_v33, %v178_v47 }
  0x67   :  { %983 = vmatprep.mubr.f32.mxu0 %v616_v7  ;;  %1423 = vmatpush3.msra.mxu1 %v478_v8  ;;  %v557_v21 = vld [vmem:[%s2430_s1 + $0x778] sm:$0xff]  ;;  %v538_v35 = vld [vmem:[%s2430_s1 + $0x6e0] sm:$0xff]  ;;  %v311_v51 = vrot.slane %v310_v37, 4  ;;  %v290_v52 = vrot.slane %v289_v38, 4  ;;  %v536_v54 = vld [vmem:[%s2430_s1 + $0x6d0] sm:$0xff]  ;;  %v192_v55 = vrot.slane %v191_v41, 4  ;;  %v186_v61 = vmax.f32 %v184_v31, %v185_v45 }
  0x68   :  { %984 = vmatmul.mubr.f32.vlgmr.msra.gmra.mxu0 %v615_v11  ;;  %1053 = vmatprep.mubr.f32.mxu1 %v618_v12  ;;  %v570_v39 = vld [vmem:[%s2430_s1 + $0x7e0] sm:$0xff]  ;;  %v537_v44 = vld [vmem:[%s2430_s1 + $0x6d8] sm:$0xff]  ;;  %v304_v56 = vrot.slane %v303_v42, 4  ;;  %v568_v57 = vld [vmem:[%s2430_s1 + $0x7d0] sm:$0xff]  ;;  %v298_v62 = vmax.f32 %v296_v32, %v297_v46  ;;  %v200_v2 = vmax.f32 %v198_v36, %v199_v50 }
  0x69   :  { %1427 = vmatprep.subr.mxu0 %v541_v15  ;;  %1462 = vmatprep.subr.mxu1 %v573_v16  ;;  %v522_v40 = vld [vmem:[%s2430_s1 + $0x660] sm:$0xff]  ;;  %v569_v48 = vld [vmem:[%s2430_s1 + $0x7d8] sm:$0xff]  ;;  %v520_v58 = vld [vmem:[%s2430_s1 + $0x650] sm:$0xff]  ;;  %v312_v3 = vmax.f32 %v310_v37, %v311_v51  ;;  %v291_v4 = vmax.f32 %v289_v38, %v290_v52  ;;  %v193_v7 = vmax.f32 %v191_v41, %v192_v55  ;;  %v187_v13 = vrot.slane %v186_v61, 2 }
  0x6a   :  { %1054 = vmatmul.mubr.f32.vlgmr.msra.gmra.mxu1 %v617_v17  ;;  %1428 = vmatpush3.msra.mxu0 %v525_v18  ;;  %v554_v43 = vld [vmem:[%s2430_s1 + $0x760] sm:$0xff]  ;;  %v521_v49 = vld [vmem:[%s2430_s1 + $0x658] sm:$0xff]  ;;  %v552_v59 = vld [vmem:[%s2430_s1 + $0x750] sm:$0xff]  ;;  %v305_v8 = vmax.f32 %v303_v42, %v304_v56  ;;  %v299_v14 = vrot.slane %v298_v62, 2  ;;  %v180_v15 = vrot.slane %v179_v63, 2  ;;  %v201_v18 = vrot.slane %v200_v2, 2 }
  0x6b   :  { %1463 = vmatpush3.msra.mxu1 %v557_v21  ;;  %1429 = vmatprep.subr.mxu0 %v540_v22  ;;  %v553_v53 = vld [vmem:[%s2430_s1 + $0x758] sm:$0xff]  ;;  %v535_v60 = vld [vmem:[%s2430_s1 + $0x6c8] sm:$0xff]  ;;  %v534_v6 = vld [vmem:[%s2430_s1 + $0x6c0] sm:$0xff]  ;;  %v313_v19 = vrot.slane %v312_v3, 2  ;;  %v292_v20 = vrot.slane %v291_v4, 2  ;;  %v194_v23 = vrot.slane %v193_v7, 2 }
  0x6c   :  { %1464 = vmatprep.subr.mxu1 %v572_v25  ;;  %1430 = vmatpush3.msra.mxu0 %v524_v26  ;;  %v567_v0 = vld [vmem:[%s2430_s1 + $0x7c8] sm:$0xff]  ;;  %v566_v9 = vld [vmem:[%s2430_s1 + $0x7c0] sm:$0xff]  ;;  %v533_v12 = vld [vmem:[%s2430_s1 + $0x6b8] sm:$0xff]  ;;  %v306_v24 = vrot.slane %v305_v8, 2  ;;  %v181_v31 = vmax.f32 %v179_v63, %v180_v15 }
  0x6d   :  { %1465 = vmatpush3.msra.mxu1 %v556_v27  ;;  %1431 = vmatprep.subr.mxu0 %v539_v28  ;;  %v519_v1 = vld [vmem:[%s2430_s1 + $0x648] sm:$0xff]  ;;  %v518_v10 = vld [vmem:[%s2430_s1 + $0x640] sm:$0xff]  ;;  %v565_v16 = vld [vmem:[%s2430_s1 + $0x7b8] sm:$0xff]  ;;  %v293_v36 = vmax.f32 %v291_v4, %v292_v20 }
  0x6e   :  { %1466 = vmatprep.subr.mxu1 %v571_v29  ;;  %1432 = vmatpush3.msra.mxu0 %v523_v30  ;;  %v551_v5 = vld [vmem:[%s2430_s1 + $0x748] sm:$0xff]  ;;  %v550_v11 = vld [vmem:[%s2430_s1 + $0x740] sm:$0xff]  ;;  %v517_v17 = vld [vmem:[%s2430_s1 + $0x638] sm:$0xff]  ;;  %v188_v29 = vmax.f32 %v186_v61, %v187_v13  ;;  %v300_v30 = vmax.f32 %v298_v62, %v299_v14  ;;  %v182_v47 = vrot.slane %v181_v31, 1 }
  0x6f   :  { %1467 = vmatpush3.msra.mxu1 %v555_v34  ;;  %1433 = vmatprep.subr.mxu0 %v538_v35  ;;  %v549_v21 = vld [vmem:[%s2430_s1 + $0x738] sm:$0xff]  ;;  %v532_v22 = vld [vmem:[%s2430_s1 + $0x6b0] sm:$0xff]  ;;  %v531_v28 = vld [vmem:[%s2430_s1 + $0x6a8] sm:$0xff]  ;;  %v202_v34 = vmax.f32 %v200_v2, %v201_v18  ;;  %v314_v35 = vmax.f32 %v312_v3, %v313_v19  ;;  %v294_v52 = vrot.slane %v293_v36, 1 }
  0x70   :  { %1468 = vmatprep.subr.mxu1 %v570_v39  ;;  %1434 = vmatpush3.msra.mxu0 %v522_v40  ;;  %v564_v25 = vld [vmem:[%s2430_s1 + $0x7b0] sm:$0xff]  ;;  %v563_v32 = vld [vmem:[%s2430_s1 + $0x7a8] sm:$0xff]  ;;  %v530_v38 = vld [vmem:[%s2430_s1 + $0x6a0] sm:$0xff]  ;;  %v195_v39 = vmax.f32 %v193_v7, %v194_v23  ;;  %v307_v40 = vmax.f32 %v305_v8, %v306_v24  ;;  %v189_v45 = vrot.slane %v188_v29, 1  ;;  %v301_v46 = vrot.slane %v300_v30, 1 }
  0x71   :  { %1469 = vmatpush3.msra.mxu1 %v554_v43  ;;  %1435 = vmatprep.subr.mxu0 %v537_v44  ;;  %v516_v26 = vld [vmem:[%s2430_s1 + $0x630] sm:$0xff]  ;;  %v515_v33 = vld [vmem:[%s2430_s1 + $0x628] sm:$0xff]  ;;  %v562_v41 = vld [vmem:[%s2430_s1 + $0x7a0] sm:$0xff]  ;;  %v203_v50 = vrot.slane %v202_v34, 1  ;;  %v315_v51 = vrot.slane %v314_v35, 1  ;;  %v183_v63 = vmax.f32 %v181_v31, %v182_v47  ;;  %v295_v4 = vmax.f32 %v293_v36, %v294_v52 }
  0x72   :  { %1470 = vmatprep.subr.mxu1 %v569_v48  ;;  %1436 = vmatpush3.msra.mxu0 %v521_v49  ;;  %v548_v27 = vld [vmem:[%s2430_s1 + $0x730] sm:$0xff]  ;;  %v547_v37 = vld [vmem:[%s2430_s1 + $0x728] sm:$0xff]  ;;  %v514_v42 = vld [vmem:[%s2430_s1 + $0x620] sm:$0xff]  ;;  %v196_v55 = vrot.slane %v195_v39, 1  ;;  %v308_v56 = vrot.slane %v307_v40, 1  ;;  %v190_v61 = vmax.f32 %v188_v29, %v189_v45  ;;  %v302_v62 = vmax.f32 %v300_v30, %v301_v46 }
  0x73   :  { %1471 = vmatpush3.msra.mxu1 %v553_v53  ;;  %1437 = vmatprep.subr.mxu0 %v536_v54  ;;  %v546_v43 = vld [vmem:[%s2430_s1 + $0x720] sm:$0xff]  ;;  %v529_v44 = vld [vmem:[%s2430_s1 + $0x698] sm:$0xff]  ;;  %v528_v54 = vld [vmem:[%s2430_s1 + $0x690] sm:$0xff]  ;;  %v204_v2 = vmax.f32 %v202_v34, %v203_v50  ;;  %v316_v3 = vmax.f32 %v314_v35, %v315_v51  ;;  %v619_v14 = vsel %vm606_vm1, %v295_v4, %v183_v63 }
  0x74   :  { %1472 = vmatprep.subr.mxu1 %v568_v57  ;;  %1438 = vmatpush3.msra.mxu0 %v520_v58  ;;  %v561_v48 = vld [vmem:[%s2430_s1 + $0x798] sm:$0xff]  ;;  %v560_v57 = vld [vmem:[%s2430_s1 + $0x790] sm:$0xff]  ;;  %v197_v7 = vmax.f32 %v195_v39, %v196_v55  ;;  %v309_v8 = vmax.f32 %v307_v40, %v308_v56 }
  0x75   :  { %1473 = vmatpush3.msra.mxu1 %v552_v59  ;;  %1439 = vmatprep.subr.mxu0 %v535_v60  ;;  %v513_v49 = vld [vmem:[%s2430_s1 + $0x618] sm:$0xff]  ;;  %v512_v58 = vld [vmem:[%s2430_s1 + $0x610] sm:$0xff]  ;;  %v527_v60 = vld [vmem:[%s2430_s1 + $0x688] sm:$0xff]  ;;  %v622_v13 = vsel %vm606_vm1, %v316_v3, %v204_v2 }
  0x76   :  { %1474 = vmatprep.subr.mxu1 %v567_v0  ;;  %1440 = vmatpush3.msra.mxu0 %v519_v1  ;;  %v545_v53 = vld [vmem:[%s2430_s1 + $0x718] sm:$0xff]  ;;  %v544_v59 = vld [vmem:[%s2430_s1 + $0x710] sm:$0xff]  ;;  %v559_v0 = vld [vmem:[%s2430_s1 + $0x788] sm:$0xff]  ;;  %v621_v15 = vsel %vm606_vm1, %v309_v8, %v197_v7 }
  0x77   :  { %1475 = vmatpush3.msra.mxu1 %v551_v5  ;;  %1441 = vmatprep.subr.mxu0 %v534_v6  ;;  %v511_v1 = vld [vmem:[%s2430_s1 + $0x608] sm:$0xff]  ;;  %v526_v6 = vld [vmem:[%s2430_s1 + $0x680] sm:$0xff] }
  0x78   :  { %1476 = vmatprep.subr.mxu1 %v566_v9  ;;  %1442 = vmatpush3.msra.mxu0 %v518_v10  ;;  %v543_v5 = vld [vmem:[%s2430_s1 + $0x708] sm:$0xff]  ;;  %v558_v9 = vld [vmem:[%s2430_s1 + $0x780] sm:$0xff] }
  0x79   :  { %1477 = vmatpush3.msra.mxu1 %v550_v11  ;;  %1443 = vmatprep.subr.mxu0 %v533_v12  ;;  %v510_v10 = vld [vmem:[%s2430_s1 + $0x600] sm:$0xff]  ;;  %v620_v11 = vsel %vm606_vm1, %v302_v62, %v190_v61 }
  0x7a   :  { %1478 = vmatprep.subr.mxu1 %v565_v16  ;;  %1444 = vmatpush3.msra.mxu0 %v517_v17  ;;  %v542_v12 = vld [vmem:[%s2430_s1 + $0x700] sm:$0xff]  ;;  %s1536_s1 = smov [#allocation2]  }
  0x7b   :  { %1479 = vmatpush3.msra.mxu1 %v549_v21  ;;  %1445 = vmatprep.subr.mxu0 %v532_v22  ;;  %v1216_v16 = vld [vmem:[%s2431_s2] ss:$0 sm:$0xff]  ;;  %s1208_s2 = sshll.u32 %s1536_s1, 4  ;;  %s1209_s2 = int_to_ptr.vmem [resolvable:$true] %s1208_s2 }
  0x7c   :  { %1480 = vmatprep.subr.mxu1 %v564_v25  ;;  %1446 = vmatpush3.msra.mxu0 %v516_v26  ;;  %27 = vst.msk [vmem:[#allocation2] sm:$0x3] %vm26_vm2, %v1216_v16  ;;  %s1514_s13 = scalar_lea.vmem %s1209_s2, 32  ;;  %p1519_p1 = scmp.lt.s32.totalorder %s1209_s2, %s1209_s2 }
  0x7d   :  { %1481 = vmatpush3.msra.mxu1 %v548_v27  ;;  %1447 = vmatprep.subr.mxu0 %v531_v28  ;;  %p1515_p0 = scmp.ne.s32.totalorder %s1209_s2, %s1514_s13  ;;  %p1520_p2 = scmp.lt.s32.totalorder %s1514_s13, %s1514_s13 }
  0x7e   :  { %1482 = vmatprep.subr.mxu1 %v563_v32  ;;  %1448 = vmatpush3.msra.mxu0 %v515_v33 }
  0x7f   :  { %1483 = vmatpush3.msra.mxu1 %v547_v37  ;;  %1449 = vmatprep.subr.mxu0 %v530_v38  ;;  %p1521_p3 = por %p1520_p2, %p1519_p1 }
  0x80   :  { %1484 = vmatprep.subr.mxu1 %v562_v41  ;;  %1450 = vmatpush3.msra.mxu0 %v514_v42 }
  0x81   :  { %1485 = vmatpush3.msra.mxu1 %v546_v43  ;;  %1451 = vmatprep.subr.mxu0 %v529_v44  ;;  %p1522_p4 = pnand %p1521_p3, %p1515_p0 }
  0x82   :  { %1486 = vmatprep.subr.mxu1 %v561_v48  ;;  %1452 = vmatpush3.msra.mxu0 %v513_v49 }
  0x83   :  { %1487 = vmatpush3.msra.mxu1 %v545_v53  ;;  %1453 = vmatprep.subr.mxu0 %v528_v54  ;;  %v317_v47 = vld [vmem:[#allocation2] sm:$0x3] }
  0x84   :  { %1488 = vmatprep.subr.mxu1 %v560_v57  ;;  %1454 = vmatpush3.msra.mxu0 %v512_v58 }
  0x85   :  { %1489 = vmatpush3.msra.mxu1 %v544_v59  ;;  %1455 = vmatprep.subr.mxu0 %v527_v60 }
  0x86   :  { %1490 = vmatprep.subr.mxu1 %v559_v0  ;;  %1456 = vmatpush3.msra.mxu0 %v511_v1 }
  0x87   :  { %1491 = vmatpush3.msra.mxu1 %v543_v5  ;;  %1457 = vmatprep.subr.mxu0 %v526_v6 }
  0x88   :  { %1492 = vmatprep.subr.mxu1 %v558_v9  ;;  %1458 = vmatpush3.msra.mxu0 %v510_v10 }
  0x89   :  { %1123 = vmatprep.mubr.f32.mxu0 %v620_v11  ;;  %1493 = vmatpush3.msra.mxu1 %v542_v12 }
  0x8a   :  { %1193 = vmatprep.mubr.f32.mxu1 %v622_v13  ;;  %1124 = vmatmul.mubr.f32.vlgmr.msra.gmra.mxu0 %v619_v14 }
  0x8b   :  { %1194 = vmatmul.mubr.f32.vlgmr.msra.gmra.mxu1 %v621_v15 }
  0xe5   :  { %v1249_v17 = vpop.f32.mrf.mxu0 }
  0xe6   :  { %v1284_v18 = vpop.f32.mrf.mxu1 }
  0xe7   :  { %v1250_v19 = vpop.f32.mrf.mxu0 }
  0xe8   :  { %v1285_v21 = vpop.f32.mrf.mxu1  ;;  %v1251_v24 = vadd.f32 %v1250_v19, %v1249_v17 }
  0xe9   :  { %v1286_v25 = vadd.f32 %v1285_v21, %v1284_v18 }
  0xeb   :  { %v776_v29 = vadd.f32 %v1286_v25, %v1251_v24 }
 0x106   :  { %v1319_v20 = vpop.f32.mrf.mxu0 }
 0x108   :  { %v1354_v22 = vpop.f32.mrf.mxu1  ;;  %v1320_v23 = vpop.f32.mrf.mxu0 }
 0x109   :  { %v1321_v27 = vadd.f32 %v1320_v23, %v1319_v20 }
 0x10a   :  { %v1355_v28 = vpop.f32.mrf.mxu1 }
 0x10b   :  { %v846_v32 = vadd.f32 %v1321_v27, %v776_v29  ;;  %v1356_v33 = vadd.f32 %v1355_v28, %v1354_v22 }
 0x10d   :  { %v916_v36 = vadd.f32 %v1356_v33, %v846_v32 }
 0x128   :  { %v1389_v26 = vpop.f32.mrf.mxu0 }
 0x12a   :  { %v1424_v30 = vpop.f32.mrf.mxu1  ;;  %v1390_v31 = vpop.f32.mrf.mxu0 }
 0x12b   :  { %v1391_v34 = vadd.f32 %v1390_v31, %v1389_v26 }
 0x12c   :  { %v1425_v35 = vpop.f32.mrf.mxu1 }
 0x12d   :  { %v986_v37 = vadd.f32 %v1391_v34, %v916_v36  ;;  %v1426_v38 = vadd.f32 %v1425_v35, %v1424_v30 }
 0x12f   :  { %v1056_v42 = vadd.f32 %v1426_v38, %v986_v37 }
 0x14a   :  { %v1459_v39 = vpop.f32.mrf.mxu0 }
 0x14b   :  { %v1494_v40 = vpop.f32.mrf.mxu1 }
 0x14c   :  { %v1460_v41 = vpop.f32.mrf.mxu0 }
 0x14d   :  { %v1461_v43 = vadd.f32 %v1460_v41, %v1459_v39  ;;  %v1495_v44 = vpop.f32.mrf.mxu1 }
 0x14e   :  { %v1496_v46 = vadd.f32 %v1495_v44, %v1494_v40 }
 0x14f   :  { %v1126_v45 = vadd.f32 %v1461_v43, %v1056_v42 }
 0x151   :  { %v1196_v48 = vadd.f32 %v1496_v46, %v1126_v45 }
 0x153   :  { %v1199_v49 = vadd.f32 %v1196_v48, %v317_v47 }
 0x155   :  { %1201 = vst.msk [vmem:[#allocation2] sm:$0x3] %vm26_vm2, %v1199_v49 }
 0x156   :  { %1525 = shalt.err (!%p1522_p4)
}
 0x157   :  { %1211 = dma.vmem_to_hbm [thread:$0]  %s1209_s2, 32, %s2432_s3, [#allocation3]  }
 0x158   :  { %1534 = dma.done.wait [#allocation3], 32  }
 0x159   :  { %1535 = vsyncadd [#allocation3], 4294967264 }
 0x15a   :  { %1215 = vsyncpa [#allocation3], 1 }

</bundles_post_ra>
